<compile_context>
chip_gen: v5e
topology: v5e:2x2
jax: 0.10.0
libtpu: 0.0.40
codegen_flags: <defaults>
</compile_context>

<pallas_src>
import jax
import jax.numpy as jnp
from jax.experimental import pallas as pl
from jax.experimental.pallas import tpu as pltpu

LANE_PAD = 128  # pad latent / policy-hidden / policy-output lanes to 128


# ------------------------------ fused kernel --------------------------------

def make_fused_kernel(n_layer):
    """Kernel closure over the (static) number of GNN layers."""

    def kernel(*refs):
        (node_ref, edge_ref, gsrc_ref, gdst_ref, s_ref,
         nenc_w_ref, nenc_b_ref, eenc_w_ref, eenc_b_ref) = refs[:9]
        layer_refs = refs[9:9 + 4 * n_layer]
        (pw1_ref, pb1_ref, pw2_ref, pb2_ref,
         logits_ref, h_out_ref) = refs[9 + 4 * n_layer:]

        relu = lambda v: jnp.maximum(v, 0.0)
        f32 = jnp.float32

        # graph structure matrices, loaded into vregs once
        gsrc = gsrc_ref[...]          # [E, N] one-hot of src
        gdst = gdst_ref[...]          # [E, N] one-hot of dst
        scat = s_ref[...]             # [N, E] scatter-sum to dst (= gdst.T)

        # encoders (lane-padded to 128)
        h = relu(jnp.dot(node_ref[...], nenc_w_ref[...],
                         preferred_element_type=f32) + nenc_b_ref[...])
        e = relu(jnp.dot(edge_ref[...], eenc_w_ref[...],
                         preferred_element_type=f32) + eenc_b_ref[...])

        # message-passing layers, statically unrolled
        for l in range(n_layer):
            ew_ref, eb_ref, nw_ref, nb_ref = layer_refs[4 * l: 4 * l + 4]
            # gather on the MXU
            hs = jnp.dot(gsrc, h, preferred_element_type=f32)   # h[src]  [E, LP]
            hd = jnp.dot(gdst, h, preferred_element_type=f32)   # h[dst]  [E, LP]
            # edge update: one K = 3*LP matmul
            x = jnp.concatenate([hs, hd, e], axis=-1)            # [E, 3*LP]
            e = relu(jnp.dot(x, ew_ref[...],
                             preferred_element_type=f32) + eb_ref[...])
            # scatter-sum + node update: one K = 2*LP matmul
            agg = jnp.dot(scat, e, preferred_element_type=f32)   # [N, LP]
            y = jnp.concatenate([h, agg], axis=-1)                # [N, 2*LP]
            h = relu(jnp.dot(y, nw_ref[...],
                             preferred_element_type=f32) + nb_ref[...])

        # policy MLP (output lane-padded to 128; real logit is column 0)
        z = relu(jnp.dot(h, pw1_ref[...],
                         preferred_element_type=f32) + pb1_ref[...])
        logits_ref[...] = (jnp.dot(z, pw2_ref[...],
                                   preferred_element_type=f32) + pb2_ref[...])
        h_out_ref[...] = h

    return kernel


# --------------------------- parameters (base) -------------------------------

def init_params(key, node_dim, edge_dim, latent_dim, n_layer, policy_hidden):
    """Unpadded / unstacked parameters (also used by the pure-JAX reference)."""
    n_keys = 2 + 5 * n_layer + 2
    keys = iter(jax.random.split(key, n_keys))

    def glorot(k, shape):
        return (jax.random.normal(k, shape, jnp.float32)
                / jnp.sqrt(shape[0])).astype(jnp.float32)

    params = {
        "node_enc_w": glorot(next(keys), (node_dim, latent_dim)),
        "node_enc_b": jnp.zeros((1, latent_dim), jnp.float32),
        "edge_enc_w": glorot(next(keys), (edge_dim, latent_dim)),
        "edge_enc_b": jnp.zeros((1, latent_dim), jnp.float32),
        "layers": [],
    }
    for _ in range(n_layer):
        params["layers"].append(dict(
            ew_src=glorot(next(keys), (latent_dim, latent_dim)),
            ew_dst=glorot(next(keys), (latent_dim, latent_dim)),
            ew_edge=glorot(next(keys), (latent_dim, latent_dim)),
            eb=jnp.zeros((1, latent_dim), jnp.float32),
            nw_self=glorot(next(keys), (latent_dim, latent_dim)),
            nw_agg=glorot(next(keys), (latent_dim, latent_dim)),
            nb=jnp.zeros((1, latent_dim), jnp.float32),
        ))
    params["pol_w1"] = glorot(next(keys), (latent_dim, policy_hidden))
    params["pol_b1"] = jnp.zeros((1, policy_hidden), jnp.float32)
    params["pol_w2"] = glorot(next(keys), (policy_hidden, 1))
    params["pol_b2"] = jnp.zeros((1, 1), jnp.float32)
    return params


def _pad2(w, rows, cols):
    r, c = w.shape
    return jnp.pad(w, ((0, rows - r), (0, cols - c)))


def prepare_kernel_params(params, lane_pad=LANE_PAD):
    """Zero-pad feature dims to 128 lanes and stack per-layer weights along K.

    Padding with zeros is numerically exact: padded lanes of h/e stay 0 through
    every relu and contribute nothing to the stacked matmuls.
    """
    lp = lane_pad
    kp = {
        "node_enc_w": _pad2(params["node_enc_w"], params["node_enc_w"].shape[0], lp),
        "node_enc_b": _pad2(params["node_enc_b"], 1, lp),
        "edge_enc_w": _pad2(params["edge_enc_w"], params["edge_enc_w"].shape[0], lp),
        "edge_enc_b": _pad2(params["edge_enc_b"], 1, lp),
        "layers": [],
    }
    for layer in params["layers"]:
        ew_stack = jnp.concatenate([_pad2(layer["ew_src"], lp, lp),
                                    _pad2(layer["ew_dst"], lp, lp),
                                    _pad2(layer["ew_edge"], lp, lp)], axis=0)  # [3*lp, lp]
        nw_stack = jnp.concatenate([_pad2(layer["nw_self"], lp, lp),
                                    _pad2(layer["nw_agg"], lp, lp)], axis=0)    # [2*lp, lp]
        kp["layers"].append(dict(
            ew_stack=ew_stack,
            eb=_pad2(layer["eb"], 1, lp),
            nw_stack=nw_stack,
            nb=_pad2(layer["nb"], 1, lp),
        ))
    kp["pol_w1"] = _pad2(params["pol_w1"], lp, lp)
    kp["pol_b1"] = _pad2(params["pol_b1"], 1, lp)
    kp["pol_w2"] = _pad2(params["pol_w2"], lp, lp)   # real logit is column 0
    kp["pol_b2"] = _pad2(params["pol_b2"], 1, lp)
    return kp


# ------------------------------- forward -------------------------------------

def constructive_bc_forward(kparams, node_feat, edge_feat, src, dst):
    """Single fused pallas_call. Returns per-node logits [N, 1] and padded
    node embeddings [N, LANE_PAD] (true features are the first latent_dim lanes)."""
    N = node_feat.shape[0]
    E = edge_feat.shape[0]
    lp = kparams["node_enc_w"].shape[1]
    n_layer = len(kparams["layers"])

    # graph structure as dense one-hot matrices, built once per graph
    node_ids = jnp.arange(N, dtype=src.dtype)
    gsrc = (src[:, None] == node_ids[None, :]).astype(jnp.float32)   # [E, N]
    gdst = (dst[:, None] == node_ids[None, :]).astype(jnp.float32)   # [E, N]
    scat = (node_ids[:, None] == dst[None, :]).astype(jnp.float32)   # [N, E]

    args = [node_feat, edge_feat, gsrc, gdst, scat,
            kparams["node_enc_w"], kparams["node_enc_b"],
            kparams["edge_enc_w"], kparams["edge_enc_b"]]
    for layer in kparams["layers"]:
        args += [layer["ew_stack"], layer["eb"], layer["nw_stack"], layer["nb"]]
    args += [kparams["pol_w1"], kparams["pol_b1"],
             kparams["pol_w2"], kparams["pol_b2"]]

    out_shape = (jax.ShapeDtypeStruct((N, lp), jnp.float32),   # padded logits
                 jax.ShapeDtypeStruct((N, lp), jnp.float32))   # padded embeddings

    # advisory cost estimate (single grid point; helps XLA schedule around it)
    nd = node_feat.shape[1]
    ed = edge_feat.shape[1]
    flops = 2 * (N * nd * lp + E * ed * lp)
    flops += n_layer * 2 * (2 * E * N * lp + E * 3 * lp * lp
                            + N * E * lp + N * 2 * lp * lp)
    flops += 2 * (N * lp * lp + N * lp * lp)
    bytes_accessed = 4 * (sum(int(a.size) for a in args) + 2 * N * lp)

    vmem_spec = pl.BlockSpec(memory_space=pltpu.MemorySpace.VMEM)
    logits_pad, h_pad = pl.pallas_call(
        make_fused_kernel(n_layer),
        out_shape=out_shape,
        in_specs=[vmem_spec] * len(args),
        out_specs=(vmem_spec, vmem_spec),
        cost_estimate=pl.CostEstimate(flops=flops, transcendentals=0,
                                      bytes_accessed=bytes_accessed),
    )(*args)

    return logits_pad[:, :1], h_pad


def reference_forward(params, node_feat, edge_feat, src, dst):
    """Pure-JAX reference using the unpadded / unstacked base parameters."""
    N = node_feat.shape[0]
    relu = lambda x: jnp.maximum(x, 0.0)
    h = relu(node_feat @ params["node_enc_w"] + params["node_enc_b"])
    e = relu(edge_feat @ params["edge_enc_w"] + params["edge_enc_b"])
    S = (dst[None, :] == jnp.arange(N, dtype=dst.dtype)[:, None]).astype(jnp.float32)
    for layer in params["layers"]:
        hs, hd = h[src], h[dst]
        e = relu(hs @ layer["ew_src"] + hd @ layer["ew_dst"]
                 + e @ layer["ew_edge"] + layer["eb"])
        agg = S @ e
        h = relu(h @ layer["nw_self"] + agg @ layer["nw_agg"] + layer["nb"])
    z = relu(h @ params["pol_w1"] + params["pol_b1"])
    return z @ params["pol_w2"] + params["pol_b2"], h


# ---------------------------------- main -------------------------------------

if __name__ == "__main__":
    NODE_DIM, EDGE_DIM, LATENT_DIM, N_LAYER, POL_HIDDEN = 6, 4, 32, 2, 32
    N_NODES, N_EDGES = 16, 48

    root = jax.random.PRNGKey(0)
    k_node, k_edge, k_src, k_dst, k_active, k_params = jax.random.split(root, 6)

    node_feat = jax.random.normal(k_node, (N_NODES, NODE_DIM), jnp.float32)
    edge_feat = jax.random.normal(k_edge, (N_EDGES, EDGE_DIM), jnp.float32)
    src = jax.random.randint(k_src, (N_EDGES,), 0, N_NODES, jnp.int32)
    dst = jax.random.randint(k_dst, (N_EDGES,), 0, N_NODES, jnp.int32)
    active = jax.random.bernoulli(k_active, 0.5, (N_NODES,))

    base_params = init_params(k_params, NODE_DIM, EDGE_DIM, LATENT_DIM,
                              N_LAYER, POL_HIDDEN)
    kparams = prepare_kernel_params(base_params)

    fwd = jax.jit(constructive_bc_forward)
    logits_all, h_pad = fwd(kparams, node_feat, edge_feat, src, dst)
    logits_all = jax.block_until_ready(logits_all)

    # active-node selection (forward returns (logits[active_nid], active_nid));
    # kept host-side: flatnonzero has a data-dependent shape and cannot be jitted.
    active_nid = jnp.flatnonzero(active)
    logits = logits_all[active_nid]
    logits = jax.block_until_ready(logits)

    # correctness vs pure-JAX reference (f32 end-to-end, so tolerance stays tight)
    ref_all, ref_h = reference_forward(base_params, node_feat, edge_feat, src, dst)
    ref = ref_all[active_nid]
    assert logits.shape == (active_nid.shape[0], 1)
    assert jnp.allclose(logits, ref, atol=1e-4, rtol=1e-4), "logit mismatch vs reference"
    assert jnp.allclose(h_pad[:, :LATENT_DIM], ref_h, atol=1e-4, rtol=1e-4), \
        "embedding mismatch vs reference"
    assert jnp.allclose(h_pad[:, LATENT_DIM:], 0.0), "padded lanes must stay zero"

    # TODO(synk): get_batch_probs / get_batch_actions (scatter_softmax, multinomial
    # sampling over ragged batches) are host-side batching utilities, not part of
    # forward(); left out of the kernel.

    print("KERNEL_OK")
</pallas_src>

<mosaic_0001>
module attributes {stable_mosaic.version = 11 : i64} {
  func.func @kernel(%arg0: memref<16x6xf32, #tpu.memory_space<vmem>>, %arg1: memref<48x4xf32, #tpu.memory_space<vmem>>, %arg2: memref<48x16xf32, #tpu.memory_space<vmem>>, %arg3: memref<48x16xf32, #tpu.memory_space<vmem>>, %arg4: memref<16x48xf32, #tpu.memory_space<vmem>>, %arg5: memref<6x128xf32, #tpu.memory_space<vmem>>, %arg6: memref<1x128xf32, #tpu.memory_space<vmem>>, %arg7: memref<4x128xf32, #tpu.memory_space<vmem>>, %arg8: memref<1x128xf32, #tpu.memory_space<vmem>>, %arg9: memref<384x128xf32, #tpu.memory_space<vmem>>, %arg10: memref<1x128xf32, #tpu.memory_space<vmem>>, %arg11: memref<256x128xf32, #tpu.memory_space<vmem>>, %arg12: memref<1x128xf32, #tpu.memory_space<vmem>>, %arg13: memref<384x128xf32, #tpu.memory_space<vmem>>, %arg14: memref<1x128xf32, #tpu.memory_space<vmem>>, %arg15: memref<256x128xf32, #tpu.memory_space<vmem>>, %arg16: memref<1x128xf32, #tpu.memory_space<vmem>>, %arg17: memref<128x128xf32, #tpu.memory_space<vmem>>, %arg18: memref<1x128xf32, #tpu.memory_space<vmem>>, %arg19: memref<128x128xf32, #tpu.memory_space<vmem>>, %arg20: memref<1x128xf32, #tpu.memory_space<vmem>>, %arg21: memref<16x128xf32, #tpu.memory_space<vmem>>, %arg22: memref<16x128xf32, #tpu.memory_space<vmem>>) attributes {dimension_semantics = [], scalar_prefetch = 0 : i64, scratch_operands = 0 : i64, tpu.core_type = #tpu.core_type<tc>} {
    %c0 = arith.constant 0 : index
    %c0_0 = arith.constant 0 : index
    %0 = vector.load %arg2[%c0, %c0_0] : memref<48x16xf32, #tpu.memory_space<vmem>>, vector<48x16xf32>
    %c0_1 = arith.constant 0 : index
    %c0_2 = arith.constant 0 : index
    %1 = vector.load %arg3[%c0_1, %c0_2] : memref<48x16xf32, #tpu.memory_space<vmem>>, vector<48x16xf32>
    %c0_3 = arith.constant 0 : index
    %c0_4 = arith.constant 0 : index
    %2 = vector.load %arg4[%c0_3, %c0_4] : memref<16x48xf32, #tpu.memory_space<vmem>>, vector<16x48xf32>
    %c0_5 = arith.constant 0 : index
    %c0_6 = arith.constant 0 : index
    %3 = vector.load %arg0[%c0_5, %c0_6] : memref<16x6xf32, #tpu.memory_space<vmem>>, vector<16x6xf32>
    %c0_7 = arith.constant 0 : index
    %c0_8 = arith.constant 0 : index
    %4 = vector.load %arg5[%c0_7, %c0_8] : memref<6x128xf32, #tpu.memory_space<vmem>>, vector<6x128xf32>
    %cst = arith.constant dense<0.000000e+00> : vector<16x128xf32>
    %5 = tpu.matmul %3, %4, %cst {dimension_numbers = #tpu.dot_dimension_numbers<[1], [0], [0], [1], [0, 0, 1, 1], [], []>} : vector<16x6xf32>, vector<6x128xf32>, vector<16x128xf32> -> vector<16x128xf32>
    %c0_9 = arith.constant 0 : index
    %c0_10 = arith.constant 0 : index
    %6 = vector.load %arg6[%c0_9, %c0_10] : memref<1x128xf32, #tpu.memory_space<vmem>>, vector<1x128xf32>
    %7 = vector.broadcast %6 : vector<1x128xf32> to vector<16x128xf32>
    %8 = arith.addf %5, %7 : vector<16x128xf32>
    %cst_11 = arith.constant 0.000000e+00 : f32
    %9 = vector.broadcast %cst_11 : f32 to vector<16x128xf32>
    %10 = arith.maximumf %8, %9 : vector<16x128xf32>
    %c0_12 = arith.constant 0 : index
    %c0_13 = arith.constant 0 : index
    %11 = vector.load %arg1[%c0_12, %c0_13] : memref<48x4xf32, #tpu.memory_space<vmem>>, vector<48x4xf32>
    %c0_14 = arith.constant 0 : index
    %c0_15 = arith.constant 0 : index
    %12 = vector.load %arg7[%c0_14, %c0_15] : memref<4x128xf32, #tpu.memory_space<vmem>>, vector<4x128xf32>
    %cst_16 = arith.constant dense<0.000000e+00> : vector<48x128xf32>
    %13 = tpu.matmul %11, %12, %cst_16 {dimension_numbers = #tpu.dot_dimension_numbers<[1], [0], [0], [1], [0, 0, 1, 1], [], []>} : vector<48x4xf32>, vector<4x128xf32>, vector<48x128xf32> -> vector<48x128xf32>
    %c0_17 = arith.constant 0 : index
    %c0_18 = arith.constant 0 : index
    %14 = vector.load %arg8[%c0_17, %c0_18] : memref<1x128xf32, #tpu.memory_space<vmem>>, vector<1x128xf32>
    %15 = vector.broadcast %14 : vector<1x128xf32> to vector<48x128xf32>
    %16 = arith.addf %13, %15 : vector<48x128xf32>
    %cst_19 = arith.constant 0.000000e+00 : f32
    %17 = vector.broadcast %cst_19 : f32 to vector<48x128xf32>
    %18 = arith.maximumf %16, %17 : vector<48x128xf32>
    %cst_20 = arith.constant dense<0.000000e+00> : vector<48x128xf32>
    %19 = tpu.matmul %0, %10, %cst_20 {dimension_numbers = #tpu.dot_dimension_numbers<[1], [0], [0], [1], [0, 0, 1, 1], [], []>} : vector<48x16xf32>, vector<16x128xf32>, vector<48x128xf32> -> vector<48x128xf32>
    %cst_21 = arith.constant dense<0.000000e+00> : vector<48x128xf32>
    %20 = tpu.matmul %1, %10, %cst_21 {dimension_numbers = #tpu.dot_dimension_numbers<[1], [0], [0], [1], [0, 0, 1, 1], [], []>} : vector<48x16xf32>, vector<16x128xf32>, vector<48x128xf32> -> vector<48x128xf32>
    %21 = tpu.concatenate %19, %20, %18 in 1 : vector<48x128xf32>, vector<48x128xf32>, vector<48x128xf32> -> vector<48x384xf32>
    %c0_22 = arith.constant 0 : index
    %c0_23 = arith.constant 0 : index
    %22 = vector.load %arg9[%c0_22, %c0_23] : memref<384x128xf32, #tpu.memory_space<vmem>>, vector<384x128xf32>
    %cst_24 = arith.constant dense<0.000000e+00> : vector<48x128xf32>
    %23 = tpu.matmul %21, %22, %cst_24 {dimension_numbers = #tpu.dot_dimension_numbers<[1], [0], [0], [1], [0, 0, 1, 1], [], []>} : vector<48x384xf32>, vector<384x128xf32>, vector<48x128xf32> -> vector<48x128xf32>
    %c0_25 = arith.constant 0 : index
    %c0_26 = arith.constant 0 : index
    %24 = vector.load %arg10[%c0_25, %c0_26] : memref<1x128xf32, #tpu.memory_space<vmem>>, vector<1x128xf32>
    %25 = vector.broadcast %24 : vector<1x128xf32> to vector<48x128xf32>
    %26 = arith.addf %23, %25 : vector<48x128xf32>
    %cst_27 = arith.constant 0.000000e+00 : f32
    %27 = vector.broadcast %cst_27 : f32 to vector<48x128xf32>
    %28 = arith.maximumf %26, %27 : vector<48x128xf32>
    %cst_28 = arith.constant dense<0.000000e+00> : vector<16x128xf32>
    %29 = tpu.matmul %2, %28, %cst_28 {dimension_numbers = #tpu.dot_dimension_numbers<[1], [0], [0], [1], [0, 0, 1, 1], [], []>} : vector<16x48xf32>, vector<48x128xf32>, vector<16x128xf32> -> vector<16x128xf32>
    %30 = tpu.concatenate %10, %29 in 1 : vector<16x128xf32>, vector<16x128xf32> -> vector<16x256xf32>
    %c0_29 = arith.constant 0 : index
    %c0_30 = arith.constant 0 : index
    %31 = vector.load %arg11[%c0_29, %c0_30] : memref<256x128xf32, #tpu.memory_space<vmem>>, vector<256x128xf32>
    %cst_31 = arith.constant dense<0.000000e+00> : vector<16x128xf32>
    %32 = tpu.matmul %30, %31, %cst_31 {dimension_numbers = #tpu.dot_dimension_numbers<[1], [0], [0], [1], [0, 0, 1, 1], [], []>} : vector<16x256xf32>, vector<256x128xf32>, vector<16x128xf32> -> vector<16x128xf32>
    %c0_32 = arith.constant 0 : index
    %c0_33 = arith.constant 0 : index
    %33 = vector.load %arg12[%c0_32, %c0_33] : memref<1x128xf32, #tpu.memory_space<vmem>>, vector<1x128xf32>
    %34 = vector.broadcast %33 : vector<1x128xf32> to vector<16x128xf32>
    %35 = arith.addf %32, %34 : vector<16x128xf32>
    %cst_34 = arith.constant 0.000000e+00 : f32
    %36 = vector.broadcast %cst_34 : f32 to vector<16x128xf32>
    %37 = arith.maximumf %35, %36 : vector<16x128xf32>
    %cst_35 = arith.constant dense<0.000000e+00> : vector<48x128xf32>
    %38 = tpu.matmul %0, %37, %cst_35 {dimension_numbers = #tpu.dot_dimension_numbers<[1], [0], [0], [1], [0, 0, 1, 1], [], []>} : vector<48x16xf32>, vector<16x128xf32>, vector<48x128xf32> -> vector<48x128xf32>
    %cst_36 = arith.constant dense<0.000000e+00> : vector<48x128xf32>
    %39 = tpu.matmul %1, %37, %cst_36 {dimension_numbers = #tpu.dot_dimension_numbers<[1], [0], [0], [1], [0, 0, 1, 1], [], []>} : vector<48x16xf32>, vector<16x128xf32>, vector<48x128xf32> -> vector<48x128xf32>
    %40 = tpu.concatenate %38, %39, %28 in 1 : vector<48x128xf32>, vector<48x128xf32>, vector<48x128xf32> -> vector<48x384xf32>
    %c0_37 = arith.constant 0 : index
    %c0_38 = arith.constant 0 : index
    %41 = vector.load %arg13[%c0_37, %c0_38] : memref<384x128xf32, #tpu.memory_space<vmem>>, vector<384x128xf32>
    %cst_39 = arith.constant dense<0.000000e+00> : vector<48x128xf32>
    %42 = tpu.matmul %40, %41, %cst_39 {dimension_numbers = #tpu.dot_dimension_numbers<[1], [0], [0], [1], [0, 0, 1, 1], [], []>} : vector<48x384xf32>, vector<384x128xf32>, vector<48x128xf32> -> vector<48x128xf32>
    %c0_40 = arith.constant 0 : index
    %c0_41 = arith.constant 0 : index
    %43 = vector.load %arg14[%c0_40, %c0_41] : memref<1x128xf32, #tpu.memory_space<vmem>>, vector<1x128xf32>
    %44 = vector.broadcast %43 : vector<1x128xf32> to vector<48x128xf32>
    %45 = arith.addf %42, %44 : vector<48x128xf32>
    %cst_42 = arith.constant 0.000000e+00 : f32
    %46 = vector.broadcast %cst_42 : f32 to vector<48x128xf32>
    %47 = arith.maximumf %45, %46 : vector<48x128xf32>
    %cst_43 = arith.constant dense<0.000000e+00> : vector<16x128xf32>
    %48 = tpu.matmul %2, %47, %cst_43 {dimension_numbers = #tpu.dot_dimension_numbers<[1], [0], [0], [1], [0, 0, 1, 1], [], []>} : vector<16x48xf32>, vector<48x128xf32>, vector<16x128xf32> -> vector<16x128xf32>
    %49 = tpu.concatenate %37, %48 in 1 : vector<16x128xf32>, vector<16x128xf32> -> vector<16x256xf32>
    %c0_44 = arith.constant 0 : index
    %c0_45 = arith.constant 0 : index
    %50 = vector.load %arg15[%c0_44, %c0_45] : memref<256x128xf32, #tpu.memory_space<vmem>>, vector<256x128xf32>
    %cst_46 = arith.constant dense<0.000000e+00> : vector<16x128xf32>
    %51 = tpu.matmul %49, %50, %cst_46 {dimension_numbers = #tpu.dot_dimension_numbers<[1], [0], [0], [1], [0, 0, 1, 1], [], []>} : vector<16x256xf32>, vector<256x128xf32>, vector<16x128xf32> -> vector<16x128xf32>
    %c0_47 = arith.constant 0 : index
    %c0_48 = arith.constant 0 : index
    %52 = vector.load %arg16[%c0_47, %c0_48] : memref<1x128xf32, #tpu.memory_space<vmem>>, vector<1x128xf32>
    %53 = vector.broadcast %52 : vector<1x128xf32> to vector<16x128xf32>
    %54 = arith.addf %51, %53 : vector<16x128xf32>
    %cst_49 = arith.constant 0.000000e+00 : f32
    %55 = vector.broadcast %cst_49 : f32 to vector<16x128xf32>
    %56 = arith.maximumf %54, %55 : vector<16x128xf32>
    %c0_50 = arith.constant 0 : index
    %c0_51 = arith.constant 0 : index
    %57 = vector.load %arg17[%c0_50, %c0_51] : memref<128x128xf32, #tpu.memory_space<vmem>>, vector<128x128xf32>
    %cst_52 = arith.constant dense<0.000000e+00> : vector<16x128xf32>
    %58 = tpu.matmul %56, %57, %cst_52 {dimension_numbers = #tpu.dot_dimension_numbers<[1], [0], [0], [1], [0, 0, 1, 1], [], []>} : vector<16x128xf32>, vector<128x128xf32>, vector<16x128xf32> -> vector<16x128xf32>
    %c0_53 = arith.constant 0 : index
    %c0_54 = arith.constant 0 : index
    %59 = vector.load %arg18[%c0_53, %c0_54] : memref<1x128xf32, #tpu.memory_space<vmem>>, vector<1x128xf32>
    %60 = vector.broadcast %59 : vector<1x128xf32> to vector<16x128xf32>
    %61 = arith.addf %58, %60 : vector<16x128xf32>
    %cst_55 = arith.constant 0.000000e+00 : f32
    %62 = vector.broadcast %cst_55 : f32 to vector<16x128xf32>
    %63 = arith.maximumf %61, %62 : vector<16x128xf32>
    %c0_56 = arith.constant 0 : index
    %c0_57 = arith.constant 0 : index
    %64 = vector.load %arg19[%c0_56, %c0_57] : memref<128x128xf32, #tpu.memory_space<vmem>>, vector<128x128xf32>
    %cst_58 = arith.constant dense<0.000000e+00> : vector<16x128xf32>
    %65 = tpu.matmul %63, %64, %cst_58 {dimension_numbers = #tpu.dot_dimension_numbers<[1], [0], [0], [1], [0, 0, 1, 1], [], []>} : vector<16x128xf32>, vector<128x128xf32>, vector<16x128xf32> -> vector<16x128xf32>
    %c0_59 = arith.constant 0 : index
    %c0_60 = arith.constant 0 : index
    %66 = vector.load %arg20[%c0_59, %c0_60] : memref<1x128xf32, #tpu.memory_space<vmem>>, vector<1x128xf32>
    %67 = vector.broadcast %66 : vector<1x128xf32> to vector<16x128xf32>
    %68 = arith.addf %65, %67 : vector<16x128xf32>
    %c0_61 = arith.constant 0 : index
    %c0_62 = arith.constant 0 : index
    %69 = vector.load %arg21[%c0_61, %c0_62] : memref<16x128xf32, #tpu.memory_space<vmem>>, vector<16x128xf32>
    tpu.vector_store %arg21[%c0_61, %c0_62], %68 {strides = array<i32>} : memref<16x128xf32, #tpu.memory_space<vmem>>, vector<16x128xf32>,
    %c0_63 = arith.constant 0 : index
    %c0_64 = arith.constant 0 : index
    %70 = vector.load %arg22[%c0_63, %c0_64] : memref<16x128xf32, #tpu.memory_space<vmem>>, vector<16x128xf32>
    tpu.vector_store %arg22[%c0_63, %c0_64], %56 {strides = array<i32>} : memref<16x128xf32, #tpu.memory_space<vmem>>, vector<16x128xf32>,
    return
  }
}

</mosaic_0001>

<bundles_post_ra>
// kernel: constructive_bc_forward.1
= control target key start
LH: loop header
LB: loop body
LE: loop exit
PB: predicated region body
PF: predicated region fallthrough
CT: control target
= control target key end

     0   :  { %s1789_s0 = inlined_call_operand.vmem [shape: f32[16,6], index: 0, kind: input, shape index: {}]   ;;  %s1790_s1 = inlined_call_operand.vmem [shape: f32[48,4], index: 1, kind: input, shape index: {}]   ;;  %s1791_s2 = inlined_call_operand.vmem [shape: f32[48,16], index: 2, kind: input, shape index: {}]   ;;  %s1792_s3 = inlined_call_operand.vmem [shape: f32[48,16], index: 3, kind: input, shape index: {}]   ;;  %s1793_s4 = inlined_call_operand.vmem [shape: f32[16,48], index: 4, kind: input, shape index: {}]   ;;  %s1794_s5 = inlined_call_operand.vmem [shape: f32[6,128], index: 5, kind: input, shape index: {}]   ;;  %s1795_s6 = inlined_call_operand.vmem [shape: f32[1,128], index: 6, kind: input, shape index: {}]   ;;  %s1796_s7 = inlined_call_operand.vmem [shape: f32[4,128], index: 7, kind: input, shape index: {}]   ;;  %s1797_s8 = inlined_call_operand.vmem [shape: f32[1,128], index: 8, kind: input, shape index: {}]   ;;  %s1798_s9 = inlined_call_operand.hbm [shape: f32[384,128], index: 9, kind: input, shape index: {}]   ;;  %s1799_s10 = inlined_call_operand.vmem [shape: f32[1,128], index: 10, kind: input, shape index: {}]   ;;  %s1800_s11 = inlined_call_operand.hbm [shape: f32[256,128], index: 11, kind: input, shape index: {}]   ;;  %s1801_s12 = inlined_call_operand.vmem [shape: f32[1,128], index: 12, kind: input, shape index: {}]   ;;  %s1802_s13 = inlined_call_operand.hbm [shape: f32[384,128], index: 13, kind: input, shape index: {}]   ;;  %s1803_s14 = inlined_call_operand.vmem [shape: f32[1,128], index: 14, kind: input, shape index: {}]   ;;  %s1804_s15 = inlined_call_operand.hbm [shape: f32[256,128], index: 15, kind: input, shape index: {}]   ;;  %s1805_s16 = inlined_call_operand.vmem [shape: f32[1,128], index: 16, kind: input, shape index: {}]   ;;  %s1806_s17 = inlined_call_operand.vmem [shape: f32[128,128], index: 17, kind: input, shape index: {}]   ;;  %s1807_s18 = inlined_call_operand.vmem [shape: f32[1,128], index: 18, kind: input, shape index: {}]   ;;  %s1808_s19 = inlined_call_operand.hbm [shape: f32[128,128], index: 19, kind: input, shape index: {}]   ;;  %s1809_s20 = inlined_call_operand.vmem [shape: f32[1,128], index: 20, kind: input, shape index: {}]   ;;  %s1810_s21 = inlined_call_operand.vmem [shape: f32[16,128], index: 21, kind: output, shape index: {0}]   ;;  %s1811_s22 = inlined_call_operand.hbm [shape: f32[16,128], index: 22, kind: output, shape index: {1}]  }
   0x1   :  { %1817 = sst [smem:[#allocation16_spill]] %s1789_s0 }
   0x2   :  { %1818 = sst [smem:[#allocation17_spill]] %s1790_s1 }
   0x3   :  { %1819 = sst [smem:[#allocation18_spill]] %s1791_s2 }
   0x4   :  { %1820 = sst [smem:[#allocation19_spill]] %s1792_s3 }
   0x5   :  { %1821 = sst [smem:[#allocation20_spill]] %s1793_s4 }
   0x6   :  { %1822 = sst [smem:[#allocation21_spill]] %s1794_s5 }
   0x7   :  { %1823 = sst [smem:[#allocation22_spill]] %s1795_s6 }
   0x8   :  { %28 = vsyncpa [#allocation3], 0 }
   0x9   :  { %29 = vsyncpa [#allocation6], 0 }
   0xa   :  { %30 = vsyncpa [#allocation9], 0 }
   0xb   :  { %31 = vsyncpa [#allocation4], 0  ;;  %s69_s29 = sshll.u32 %s1800_s11, 4  ;;  %s1328_s30 = smov [#allocation5]   ;;  %s70_s29 = int_to_ptr.hbm [resolvable:$true] %s69_s29 }
   0xc   :  { %s71_s4 = sshll.u32 %s1328_s30, 4  ;;  %s99_s1 = sshll.u32 %s1804_s15, 4  ;;  %s72_s4 = int_to_ptr.vmem [resolvable:$true] %s71_s4  ;;  %s100_s1 = int_to_ptr.hbm [resolvable:$true] %s99_s1 }
   0xd   :  { %s1329_s5 = smov 128   ;;  %s1330_s24 = smov 8  }
   0xe   :  { %77 = dma.hbm_to_vmem [thread:$0]  %s70_s29, 4096, %s72_s4, [#allocation6], %s1329_s5, %s1329_s5, %s1330_s24  }
   0xf   :  { %s1331_s6 = smov [#allocation8]   ;;  %s54_s11 = sshll.u32 %s1798_s9, 4  ;;  %s55_s11 = int_to_ptr.hbm [resolvable:$true] %s54_s11 }
  0x10   :  { %s101_s25 = sshll.u32 %s1331_s6, 4  ;;  %s84_s3 = sshll.u32 %s1802_s13, 4  ;;  %s102_s25 = int_to_ptr.vmem [resolvable:$true] %s101_s25  ;;  %s85_s3 = int_to_ptr.hbm [resolvable:$true] %s84_s3 }
  0x11   :  { %107 = dma.hbm_to_vmem [thread:$0]  %s100_s1, 4096, %s102_s25, [#allocation9], %s1329_s5, %s1329_s5, %s1330_s24  }
  0x12   :  { %s1332_s28 = smov [#allocation2]   ;;  %s1333_s29 = smov [#allocation7]  }
  0x13   :  { %s56_s30 = sshll.u32 %s1332_s28, 4  ;;  %s86_s9 = sshll.u32 %s1333_s29, 4  ;;  %s57_s30 = int_to_ptr.vmem [resolvable:$true] %s56_s30  ;;  %s87_s9 = int_to_ptr.vmem [resolvable:$true] %s86_s9 }
  0x14   :  { %62 = dma.hbm_to_vmem [thread:$0]  %s55_s11, 6144, %s57_s30, [#allocation3], %s1329_s5, %s1329_s5, %s1330_s24  }
  0x15   :  { %s118_s23 = sshll.u32 %s1808_s19, 4  ;;  %s1334_s13 = smov [#allocation10]   ;;  %s119_s23 = int_to_ptr.hbm [resolvable:$true] %s118_s23 }
  0x16   :  { %92 = dma.hbm_to_vmem [thread:$0]  %s85_s3, 6144, %s87_s9, [#allocation6], %s1329_s5, %s1329_s5, %s1330_s24  }
  0x17   :  { %s120_s1 = sshll.u32 %s1334_s13, 4  ;;  %s121_s1 = int_to_ptr.vmem [resolvable:$true] %s120_s1 }
  0x18   :  { %126 = dma.hbm_to_vmem [thread:$0]  %s119_s23, 2048, %s121_s1, [#allocation9], %s1329_s5, %s1329_s5, %s1330_s24  }
  0x19   :  { %1320 = dma.done.wait [#allocation3], 6144  }
  0x1a   :  { %1321 = vsyncadd [#allocation3], 4294961152 }
  0x1b   :  { %1322 = dma.done.wait [#allocation6], 10240  }
  0x1c   :  { %1323 = vsyncadd [#allocation6], 4294957056 }
  0x1d   :  { %1324 = dma.done.wait [#allocation9], 6144  }
  0x1e   :  { %1325 = vsyncadd [#allocation9], 4294961152  ;;  %vm177_vm0 = vcmask 1045504   ;;  %vm170_vm1 = vcmask 48128   ;;  %s1824_s25 = sld [smem:[#allocation21_spill]]  ;;  %vm236_vm2 = vcmask 1043456  }
  0x1f   :  { %s1825_s11 = sld [smem:[#allocation16_spill]]  ;;  %v212_v3 = vld [vmem:[%s1796_s7] sm:$0xf]  ;;  %vm217_vm3 = vcmask 31744   ;;  %vm281_vm4 = vcmask 130048   ;;  %v435_v21 = vld [vmem:[#allocation2 + $0x178] sm:$0xff] }
  0x20   :  { %1125 = vmatpush.msk.msra.mxu1 %vm236_vm2, %v212_v3  ;;  %s1826_s9 = sld [smem:[#allocation17_spill]]  ;;  %v403_v22 = vld [vmem:[#allocation2 + $0x78] sm:$0xff]  ;;  %v434_v23 = vld [vmem:[#allocation2 + $0x170] sm:$0xff]  ;;  %v433_v26 = vld [vmem:[#allocation2 + $0x168] sm:$0xff]  ;;  %vm551_vm5 = vcmask 392192  }
  0x21   :  { %s1827_s19 = sld [smem:[#allocation22_spill]]  ;;  %v402_v24 = vld [vmem:[#allocation2 + $0x70] sm:$0xff]  ;;  %v419_v25 = vld [vmem:[#allocation2 + $0xf8] sm:$0xff]  ;;  %v401_v28 = vld [vmem:[#allocation2 + $0x68] sm:$0xff] }
  0x22   :  { %s1829_s3 = sld [smem:[#allocation19_spill]]  ;;  %475 = vmatpush.msrb.mxu1 %v419_v25  ;;  %v418_v27 = vld [vmem:[#allocation2 + $0xf0] sm:$0xff]  ;;  %v417_v29 = vld [vmem:[#allocation2 + $0xe8] sm:$0xff]  ;;  %v432_v30 = vld [vmem:[#allocation2 + $0x160] sm:$0xff] }
  0x23   :  { %v400_v33 = vld [vmem:[#allocation2 + $0x60] sm:$0xff]  ;;  %v431_v34 = vld [vmem:[#allocation2 + $0x158] sm:$0xff]  ;;  %v430_v37 = vld [vmem:[#allocation2 + $0x150] sm:$0xff]  ;;  %s1830_s1 = sld [smem:[#allocation20_spill]] }
  0x24   :  { %v165_v0 = vld [vmem:[%s1824_s25] sm:$0x3f]  ;;  %476 = vmatpush.msrb.mxu1 %v418_v27  ;;  %v399_v36 = vld [vmem:[#allocation2 + $0x58] sm:$0xff]  ;;  %v398_v39 = vld [vmem:[#allocation2 + $0x50] sm:$0xff] }
  0x25   :  { %v163_v1 = vld [vmem:[%s1825_s11] sm:$0xff]  ;;  %1122 = vmatpush.msk.msra.mxu0 %vm177_vm0, %v165_v0  ;;  %v164_v2 = vld [vmem:[%s1825_s11 + $0x8] sm:$0xff]  ;;  %s1828_s11 = sld [smem:[#allocation18_spill]]  ;;  %v415_v38 = vld [vmem:[#allocation2 + $0xd8] sm:$0xff] }
  0x26   :  { %1123 = vmatmul.msk.f32.vlgmr.msra.gmra.mxu0 %vm170_vm1, %v163_v1  ;;  %v206_v4 = vld [vmem:[%s1826_s9] sm:$0xff]  ;;  %v207_v5 = vld [vmem:[%s1826_s9 + $0x8] sm:$0xff]  ;;  %v208_v6 = vld [vmem:[%s1826_s9 + $0x10] sm:$0xff]  ;;  %477 = vmatpush.msrb.mxu1 %v417_v29 }
  0x27   :  { %1126 = vmatmul.msk.f32.vlgmr.msra.gmra.mxu1 %vm217_vm3, %v206_v4  ;;  %v1168_v8 = vld [vmem:[%s1827_s19] ss:$0 sm:$0xff]  ;;  %v209_v9 = vld [vmem:[%s1826_s9 + $0x18] sm:$0xff]  ;;  %v211_v20 = vld [vmem:[%s1826_s9 + $0x28] sm:$0xff]  ;;  %440 = vmatpush.msrb.mxu0 %v403_v22 }
  0x28   :  { %v1526_v16 = vld [vmem:[%s1829_s3] sm:$0xff]  ;;  %v1546_v19 = vld [vmem:[%s1829_s3 + $0x8] sm:$0xff]  ;;  %v1564_v32 = vld [vmem:[%s1829_s3 + $0x10] sm:$0xff] }
  0x29   :  { %v210_v17 = vld [vmem:[%s1826_s9 + $0x20] sm:$0xff]  ;;  %441 = vmatpush.msrb.mxu0 %v402_v24  ;;  %v429_v40 = vld [vmem:[#allocation2 + $0x148] sm:$0xff]  ;;  %v414_v41 = vld [vmem:[#allocation2 + $0xd0] sm:$0xff]  ;;  %s1105_s9 = sshll.u32 %s1811_s22, 4  ;;  %s1106_s9 = int_to_ptr.hbm [resolvable:$true] %s1105_s9 }
  0x2a   :  { %v416_v35 = vld [vmem:[#allocation2 + $0xe0] sm:$0xff]  ;;  %v397_v42 = vld [vmem:[#allocation2 + $0x48] sm:$0xff]  ;;  %v1578_v45 = vld [vmem:[%s1829_s3 + $0x18] sm:$0xff] }
  0x2b   :  { %v1521_v15 = vld [vmem:[%s1828_s11] sm:$0xff]  ;;  %v1541_v18 = vld [vmem:[%s1828_s11 + $0x8] sm:$0xff]  ;;  %v1559_v31 = vld [vmem:[%s1828_s11 + $0x10] sm:$0xff]  ;;  %442 = vmatpush.msrb.mxu0 %v401_v28  ;;  %478 = vmatpush.msrb.mxu1 %v416_v35 }
  0x2c   :  { %v428_v43 = vld [vmem:[#allocation2 + $0x140] sm:$0xff]  ;;  %v1573_v44 = vld [vmem:[%s1828_s11 + $0x18] sm:$0xff]  ;;  %v413_v47 = vld [vmem:[#allocation2 + $0xc8] sm:$0xff] }
  0x2d   :  { %443 = vmatpush.msrb.mxu0 %v400_v33  ;;  %479 = vmatpush.msrb.mxu1 %v415_v38  ;;  %v396_v46 = vld [vmem:[#allocation2 + $0x40] sm:$0xff]  ;;  %v427_v48 = vld [vmem:[#allocation2 + $0x138] sm:$0xff]  ;;  %v426_v51 = vld [vmem:[#allocation2 + $0x130] sm:$0xff] }
  0x2e   :  { %1124 = vmatmul.msk.f32.gmra.mxu0 %vm170_vm1, %v164_v2  ;;  %v395_v49 = vld [vmem:[#allocation2 + $0x38] sm:$0xff]  ;;  %v412_v50 = vld [vmem:[#allocation2 + $0xc0] sm:$0xff]  ;;  %v394_v52 = vld [vmem:[#allocation2 + $0x30] sm:$0xff] }
  0x2f   :  { %1127 = vmatmul.msk.f32.gmra.mxu1 %vm217_vm3, %v207_v5  ;;  %444 = vmatpush.msrb.mxu0 %v399_v36  ;;  %v411_v53 = vld [vmem:[#allocation2 + $0xb8] sm:$0xff]  ;;  %v425_v54 = vld [vmem:[#allocation2 + $0x128] sm:$0xff]  ;;  %v410_v56 = vld [vmem:[#allocation2 + $0xb0] sm:$0xff] }
  0x30   :  { %480 = vmatpush.msrb.mxu1 %v414_v41  ;;  %v393_v55 = vld [vmem:[#allocation2 + $0x28] sm:$0xff]  ;;  %v1587_v57 = vld [vmem:[%s1828_s11 + $0x20] sm:$0xff]  ;;  %v423_v62 = vld [vmem:[#allocation2 + $0x118] sm:$0xff] }
  0x31   :  { %445 = vmatpush.msrb.mxu0 %v398_v39  ;;  %v1592_v58 = vld [vmem:[%s1829_s3 + $0x20] sm:$0xff]  ;;  %v409_v61 = vld [vmem:[#allocation2 + $0xa8] sm:$0xff]  ;;  %v391_v1 = vld [vmem:[#allocation2 + $0x18] sm:$0xff] }
  0x32   :  { %481 = vmatpush.msrb.mxu1 %v413_v47  ;;  %v424_v59 = vld [vmem:[#allocation2 + $0x120] sm:$0xff]  ;;  %v1601_v63 = vld [vmem:[%s1828_s11 + $0x28] sm:$0xff]  ;;  %v422_v3 = vld [vmem:[#allocation2 + $0x110] sm:$0xff] }
  0x33   :  { %446 = vmatpush.msrb.mxu0 %v397_v42  ;;  %v392_v60 = vld [vmem:[#allocation2 + $0x20] sm:$0xff]  ;;  %v1606_v0 = vld [vmem:[%s1829_s3 + $0x28] sm:$0xff]  ;;  %v390_v4 = vld [vmem:[#allocation2 + $0x10] sm:$0xff]  ;;  %s1335_s3 = smov [#allocation11]  }
  0x34   :  { %482 = vmatpush.msrb.mxu1 %v412_v50  ;;  %v408_v2 = vld [vmem:[#allocation2 + $0xa0] sm:$0xff]  ;;  %v407_v5 = vld [vmem:[#allocation2 + $0x98] sm:$0xff]  ;;  %v594_v35 = vld [vmem:[#allocation5 + $0x68] sm:$0xff] }
  0x35   :  { %447 = vmatpush.msrb.mxu0 %v396_v46  ;;  %v404_v22 = vld [vmem:[#allocation2 + $0x80] sm:$0xff]  ;;  %v596_v29 = vld [vmem:[#allocation5 + $0x78] sm:$0xff]  ;;  %v591_v39 = vld [vmem:[#allocation5 + $0x50] sm:$0xff] }
  0x36   :  { %483 = vmatpush.msrb.mxu1 %v411_v53  ;;  %v592_v38 = vld [vmem:[#allocation5 + $0x58] sm:$0xff]  ;;  %v590_v41 = vld [vmem:[#allocation5 + $0x48] sm:$0xff]  ;;  %v589_v46 = vld [vmem:[#allocation5 + $0x40] sm:$0xff] }
  0x37   :  { %1128 = vmatmul.msk.f32.gmra.mxu1 %vm217_vm3, %v208_v6  ;;  %448 = vmatpush.msrb.mxu0 %v395_v49  ;;  %v421_v6 = vld [vmem:[#allocation2 + $0x108] sm:$0xff]  ;;  %v588_v49 = vld [vmem:[#allocation5 + $0x38] sm:$0xff]  ;;  %v587_v50 = vld [vmem:[#allocation5 + $0x30] sm:$0xff] }
  0x38   :  { %484 = vmatpush.msrb.mxu1 %v410_v56 }
  0x39   :  { %449 = vmatpush.msrb.mxu0 %v394_v52  ;;  %v586_v52 = vld [vmem:[#allocation5 + $0x28] sm:$0xff] }
  0x3a   :  { %485 = vmatpush.msrb.mxu1 %v409_v61  ;;  %v583_v61 = vld [vmem:[#allocation5 + $0x10] sm:$0xff] }
  0x3b   :  { %450 = vmatpush.msrb.mxu0 %v393_v55  ;;  %v585_v55 = vld [vmem:[#allocation5 + $0x20] sm:$0xff] }
  0x3c   :  { %486 = vmatpush.msrb.mxu1 %v408_v2 }
  0x3d   :  { %451 = vmatpush.msrb.mxu0 %v392_v60  ;;  %v584_v60 = vld [vmem:[#allocation5 + $0x18] sm:$0xff] }
  0x3e   :  { %487 = vmatpush.msrb.mxu1 %v407_v5 }
  0x3f   :  { %1129 = vmatmul.msk.f32.gmra.mxu1 %vm217_vm3, %v209_v9  ;;  %452 = vmatpush.msrb.mxu0 %v391_v1  ;;  %v420_v9 = vld [vmem:[#allocation2 + $0x100] sm:$0xff] }
  0x40   :  { %v581_v1 = vld [vmem:[#allocation5] sm:$0xff] }
  0x41   :  { %453 = vmatpush.msrb.mxu0 %v390_v4 }
  0x47   :  { %1130 = vmatmul.msk.f32.gmra.mxu1 %vm217_vm3, %v210_v17 }
  0x4f   :  { %1131 = vmatmul.msk.f32.gmra.mxu1 %vm217_vm3, %v211_v20  ;;  %v388_v20 = vld [vmem:[#allocation2] sm:$0xff] }
  0xa3   :  { %v198_v7 = vpop.f32.mrf.mxu0 }
  0xa4   :  { %v199_v11 = vadd.f32 %v1168_v8, %v198_v7  ;;  %v389_v7 = vld [vmem:[#allocation2 + $0x8] sm:$0xff] }
  0xa5   :  { %454 = vmatpush.msrb.mxu0 %v389_v7 }
  0xa6   :  { %v1514_v14 = vmax.f32 %v199_v11, 0.0  ;;  %v257_v11 = vpop.f32.mrf.mxu1 }
  0xa7   :  { %455 = vmatpush.msrb.mxu0 %v388_v20 }
  0xa9   :  { %617 = vmatpush.msra.mxu0 %v596_v29 }
  0xab   :  { %v201_v10 = vpop.f32.mrf.mxu0 }
  0xac   :  { %v202_v12 = vadd.f32 %v1168_v8, %v201_v10  ;;  %v406_v8 = vld [vmem:[#allocation2 + $0x90] sm:$0xff]  ;;  %v1169_v10 = vld [vmem:[%s1797_s8] ss:$0 sm:$0xff]  ;;  %s1103_s8 = sshll.u32 %s1335_s3, 4  ;;  %s1104_s8 = int_to_ptr.vmem [resolvable:$true] %s1103_s8 }
  0xad   :  { %488 = vmatpush.msrb.mxu1 %v406_v8 }
  0xae   :  { %v1512_v13 = vmax.f32 %v202_v12, 0.0  ;;  %v258_v12 = vadd.f32 %v1169_v10, %v257_v11 }
  0xb0   :  { %314 = vmatpush.msra.mxu2 %v1512_v13  ;;  %367 = vmatpush.msra.mxu3 %v1512_v13  ;;  %v275_v17 = vmax.f32 %v258_v12, 0.0 }
  0xb2   :  { %315 = vmatpush.msra.mxu2 %v1514_v14  ;;  %368 = vmatpush.msra.mxu3 %v1514_v14 }
  0xb3   :  { %1132 = vmatmul.msk.f32.vlgmr.msra.gmra.mxu2 %vm281_vm4, %v1521_v15  ;;  %1138 = vmatmul.msk.f32.vlgmr.msra.gmra.mxu3 %vm281_vm4, %v1526_v16 }
  0xb4   :  { %510 = vmatpush.msrb.mxu2 %v435_v21  ;;  %v405_v21 = vld [vmem:[#allocation2 + $0x88] sm:$0xff] }
  0xb5   :  { %489 = vmatpush.msrb.mxu1 %v405_v21 }
  0xb6   :  { %511 = vmatpush.msrb.mxu2 %v434_v23  ;;  %v260_v23 = vpop.f32.mrf.mxu1 }
  0xb7   :  { %490 = vmatpush.msrb.mxu1 %v404_v22  ;;  %v261_v24 = vadd.f32 %v1169_v10, %v260_v23 }
  0xb8   :  { %512 = vmatpush.msrb.mxu2 %v433_v26 }
  0xb9   :  { %v276_v25 = vmax.f32 %v261_v24, 0.0 }
  0xba   :  { %513 = vmatpush.msrb.mxu2 %v432_v30  ;;  %v595_v30 = vld [vmem:[#allocation5 + $0x70] sm:$0xff] }
  0xbb   :  { %1133 = vmatmul.msk.f32.gmra.mxu2 %vm281_vm4, %v1541_v18  ;;  %1139 = vmatmul.msk.f32.gmra.mxu3 %vm281_vm4, %v1546_v19 }
  0xbc   :  { %514 = vmatpush.msrb.mxu2 %v431_v34  ;;  %618 = vmatpush.msra.mxu0 %v595_v30 }
  0xbe   :  { %515 = vmatpush.msrb.mxu2 %v430_v37  ;;  %v263_v26 = vpop.f32.mrf.mxu1  ;;  %619 = vmatpush.msra.mxu0 %v594_v35  ;;  %v593_v37 = vld [vmem:[#allocation5 + $0x60] sm:$0xff] }
  0xbf   :  { %v264_v27 = vadd.f32 %v1169_v10, %v263_v26 }
  0xc0   :  { %516 = vmatpush.msrb.mxu2 %v429_v40  ;;  %620 = vmatpush.msra.mxu0 %v593_v37 }
  0xc1   :  { %v277_v28 = vmax.f32 %v264_v27, 0.0 }
  0xc2   :  { %517 = vmatpush.msrb.mxu2 %v428_v43  ;;  %621 = vmatpush.msra.mxu0 %v592_v38 }
  0xc3   :  { %1134 = vmatmul.msk.f32.gmra.mxu2 %vm281_vm4, %v1559_v31  ;;  %1140 = vmatmul.msk.f32.gmra.mxu3 %vm281_vm4, %v1564_v32 }
  0xc4   :  { %518 = vmatpush.msrb.mxu2 %v427_v48  ;;  %622 = vmatpush.msra.mxu0 %v591_v39 }
  0xc6   :  { %519 = vmatpush.msrb.mxu2 %v426_v51  ;;  %v266_v33 = vpop.f32.mrf.mxu1  ;;  %623 = vmatpush.msra.mxu0 %v590_v41 }
  0xc7   :  { %v267_v34 = vadd.f32 %v1169_v10, %v266_v33 }
  0xc8   :  { %520 = vmatpush.msrb.mxu2 %v425_v54  ;;  %624 = vmatpush.msra.mxu0 %v589_v46 }
  0xc9   :  { %v278_v36 = vmax.f32 %v267_v34, 0.0 }
  0xca   :  { %521 = vmatpush.msrb.mxu2 %v424_v59  ;;  %625 = vmatpush.msra.mxu0 %v588_v49 }
  0xcb   :  { %1135 = vmatmul.msk.f32.gmra.mxu2 %vm281_vm4, %v1573_v44  ;;  %1141 = vmatmul.msk.f32.gmra.mxu3 %vm281_vm4, %v1578_v45 }
  0xcc   :  { %522 = vmatpush.msrb.mxu2 %v423_v62  ;;  %626 = vmatpush.msra.mxu0 %v587_v50  ;;  %v582_v62 = vld [vmem:[#allocation5 + $0x8] sm:$0xff] }
  0xce   :  { %523 = vmatpush.msrb.mxu2 %v422_v3  ;;  %v269_v40 = vpop.f32.mrf.mxu1  ;;  %627 = vmatpush.msra.mxu0 %v586_v52 }
  0xcf   :  { %v270_v42 = vadd.f32 %v1169_v10, %v269_v40 }
  0xd0   :  { %524 = vmatpush.msrb.mxu2 %v421_v6  ;;  %628 = vmatpush.msra.mxu0 %v585_v55 }
  0xd1   :  { %v279_v43 = vmax.f32 %v270_v42, 0.0 }
  0xd2   :  { %525 = vmatpush.msrb.mxu2 %v420_v9  ;;  %629 = vmatpush.msra.mxu0 %v584_v60 }
  0xd3   :  { %1136 = vmatmul.msk.f32.gmra.mxu2 %vm281_vm4, %v1587_v57  ;;  %1142 = vmatmul.msk.f32.gmra.mxu3 %vm281_vm4, %v1592_v58 }
  0xd4   :  { %630 = vmatpush.msra.mxu0 %v583_v61 }
  0xd6   :  { %v272_v51 = vpop.f32.mrf.mxu1  ;;  %631 = vmatpush.msra.mxu0 %v582_v62 }
  0xd7   :  { %v273_v53 = vadd.f32 %v1169_v10, %v272_v51 }
  0xd8   :  { %632 = vmatpush.msra.mxu0 %v581_v1  ;;  %v1651_v1 = vld [vmem:[%s1830_s1] sm:$0xff] }
  0xd9   :  { %v280_v54 = vmax.f32 %v273_v53, 0.0 }
  0xdb   :  { %1137 = vmatmul.msk.f32.gmra.mxu2 %vm281_vm4, %v1601_v63  ;;  %1143 = vmatmul.msk.f32.gmra.mxu3 %vm281_vm4, %v1606_v0 }
  0xe3   :  { %526 = vmatmul.f32.vlgmr.msrb.gmra.mxu2 %v275_v17 }
  0xeb   :  { %529 = vmatmul.f32.gmra.mxu2 %v276_v25 }
  0xf3   :  { %532 = vmatmul.f32.gmra.mxu2 %v277_v28 }
  0xfb   :  { %535 = vmatmul.f32.gmra.mxu2 %v278_v36 }
 0x103   :  { %538 = vmatmul.f32.gmra.mxu2 %v279_v43 }
 0x10b   :  { %541 = vmatmul.f32.gmra.mxu2 %v280_v54 }
 0x136   :  { %v317_v47 = vpop.f32.mrf.mxu2  ;;  %v370_v48 = vpop.f32.mrf.mxu3 }
 0x137   :  { %456 = vmatmul.f32.vlgmr.msrb.gmra.mxu0 %v317_v47  ;;  %491 = vmatmul.f32.vlgmr.msrb.gmra.mxu1 %v370_v48 }
 0x13e   :  { %v320_v56 = vpop.f32.mrf.mxu2  ;;  %v373_v59 = vpop.f32.mrf.mxu3 }
 0x13f   :  { %459 = vmatmul.f32.gmra.mxu0 %v320_v56  ;;  %494 = vmatmul.f32.gmra.mxu1 %v373_v59 }
 0x146   :  { %v323_v2 = vpop.f32.mrf.mxu2  ;;  %v376_v3 = vpop.f32.mrf.mxu3 }
 0x147   :  { %462 = vmatmul.f32.gmra.mxu0 %v323_v2  ;;  %497 = vmatmul.f32.gmra.mxu1 %v376_v3  ;;  %v612_v2 = vld [vmem:[#allocation5 + $0xf8] sm:$0xff]  ;;  %v611_v3 = vld [vmem:[#allocation5 + $0xf0] sm:$0xff] }
 0x14e   :  { %v326_v4 = vpop.f32.mrf.mxu2  ;;  %v379_v5 = vpop.f32.mrf.mxu3 }
 0x14f   :  { %465 = vmatmul.f32.gmra.mxu0 %v326_v4  ;;  %500 = vmatmul.f32.gmra.mxu1 %v379_v5  ;;  %v610_v4 = vld [vmem:[#allocation5 + $0xe8] sm:$0xff]  ;;  %v609_v5 = vld [vmem:[#allocation5 + $0xe0] sm:$0xff] }
 0x156   :  { %v329_v6 = vpop.f32.mrf.mxu2  ;;  %v382_v7 = vpop.f32.mrf.mxu3 }
 0x157   :  { %468 = vmatmul.f32.gmra.mxu0 %v329_v6  ;;  %503 = vmatmul.f32.gmra.mxu1 %v382_v7  ;;  %v1660_v6 = vld [vmem:[%s1830_s1 + $0x8] sm:$0xff]  ;;  %v608_v7 = vld [vmem:[#allocation5 + $0xd8] sm:$0xff] }
 0x15e   :  { %v332_v8 = vpop.f32.mrf.mxu2  ;;  %v385_v9 = vpop.f32.mrf.mxu3 }
 0x15f   :  { %471 = vmatmul.f32.gmra.mxu0 %v332_v8  ;;  %506 = vmatmul.f32.gmra.mxu1 %v385_v9  ;;  %v607_v8 = vld [vmem:[#allocation5 + $0xd0] sm:$0xff]  ;;  %v606_v9 = vld [vmem:[#allocation5 + $0xc8] sm:$0xff] }
 0x166   :  { %v527_v10 = vpop.f32.mrf.mxu2 }
 0x167   :  { %633 = vmatmul.f32.vlgmr.msra.gmra.mxu0 %v1514_v14  ;;  %v1170_v14 = vld [vmem:[%s1799_s10] ss:$0 sm:$0xff] }
 0x16e   :  { %v530_v17 = vpop.f32.mrf.mxu2 }
 0x16f   :  { %636 = vmatmul.f32.gmra.mxu0 %v1512_v13 }
 0x176   :  { %v533_v22 = vpop.f32.mrf.mxu2 }
 0x17e   :  { %v536_v25 = vpop.f32.mrf.mxu2 }
 0x186   :  { %v539_v28 = vpop.f32.mrf.mxu2 }
 0x18e   :  { %v542_v39 = vpop.f32.mrf.mxu2 }
 0x1b4   :  { %v457_v11 = vpop.f32.mrf.mxu0  ;;  %v492_v12 = vpop.f32.mrf.mxu1 }
 0x1b5   :  { %v458_v43 = vadd.f32 %v1170_v14, %v457_v11  ;;  %v604_v11 = vld [vmem:[#allocation5 + $0xb8] sm:$0xff] }
 0x1b7   :  { %v493_v52 = vadd.f32 %v492_v12, %v458_v43  ;;  %v603_v12 = vld [vmem:[#allocation5 + $0xb0] sm:$0xff] }
 0x1b8   :  { %v777_v43 = vld [vmem:[#allocation7 + $0x150] sm:$0xff] }
 0x1b9   :  { %v1637_v59 = vadd.f32 %v527_v10, %v493_v52  ;;  %v605_v10 = vld [vmem:[#allocation5 + $0xc0] sm:$0xff] }
 0x1ba   :  { %v771_v52 = vld [vmem:[#allocation7 + $0x120] sm:$0xff] }
 0x1bb   :  { %v545_v62 = vmax.f32 %v1637_v59, 0.0  ;;  %v762_v59 = vld [vmem:[#allocation7 + $0xd8] sm:$0xff] }
 0x1bc   :  { %v460_v20 = vpop.f32.mrf.mxu0  ;;  %v495_v21 = vpop.f32.mrf.mxu1 }
 0x1bd   :  { %v461_v40 = vadd.f32 %v1170_v14, %v460_v20  ;;  %v601_v20 = vld [vmem:[#allocation5 + $0xa0] sm:$0xff] }
 0x1bf   :  { %v496_v49 = vadd.f32 %v495_v21, %v461_v40  ;;  %v600_v21 = vld [vmem:[#allocation5 + $0x98] sm:$0xff]  ;;  %v780_v40 = vld [vmem:[#allocation7 + $0x168] sm:$0xff] }
 0x1c1   :  { %v1632_v55 = vadd.f32 %v530_v17, %v496_v49  ;;  %v602_v17 = vld [vmem:[#allocation5 + $0xa8] sm:$0xff]  ;;  %v773_v49 = vld [vmem:[#allocation7 + $0x130] sm:$0xff] }
 0x1c3   :  { %v546_v61 = vmax.f32 %v1632_v55, 0.0  ;;  %v745_v55 = vld [vmem:[#allocation7 + $0x50] sm:$0xff] }
 0x1c4   :  { %v463_v23 = vpop.f32.mrf.mxu0  ;;  %v498_v24 = vpop.f32.mrf.mxu1 }
 0x1c5   :  { %v464_v36 = vadd.f32 %v1170_v14, %v463_v23  ;;  %v598_v23 = vld [vmem:[#allocation5 + $0x88] sm:$0xff] }
 0x1c7   :  { %v499_v46 = vadd.f32 %v498_v24, %v464_v36  ;;  %v597_v24 = vld [vmem:[#allocation5 + $0x80] sm:$0xff] }
 0x1c9   :  { %v1627_v53 = vadd.f32 %v533_v22, %v499_v46  ;;  %v599_v22 = vld [vmem:[#allocation5 + $0x90] sm:$0xff]  ;;  %v775_v46 = vld [vmem:[#allocation7 + $0x140] sm:$0xff] }
 0x1cb   :  { %v547_v60 = vmax.f32 %v1627_v53, 0.0  ;;  %v741_v53 = vld [vmem:[#allocation7 + $0x30] sm:$0xff] }
 0x1cc   :  { %v466_v26 = vpop.f32.mrf.mxu0  ;;  %v501_v27 = vpop.f32.mrf.mxu1 }
 0x1cd   :  { %v467_v33 = vadd.f32 %v1170_v14, %v466_v26 }
 0x1cf   :  { %v502_v41 = vadd.f32 %v501_v27, %v467_v33 }
 0x1d1   :  { %v1624_v50 = vadd.f32 %v536_v25, %v502_v41  ;;  %v779_v41 = vld [vmem:[#allocation7 + $0x160] sm:$0xff] }
 0x1d3   :  { %v548_v56 = vmax.f32 %v1624_v50, 0.0  ;;  %v737_v50 = vld [vmem:[#allocation7 + $0x10] sm:$0xff] }
 0x1d4   :  { %v469_v29 = vpop.f32.mrf.mxu0  ;;  %v504_v30 = vpop.f32.mrf.mxu1 }
 0x1d5   :  { %v470_v13 = vadd.f32 %v1170_v14, %v469_v29  ;;  %v1171_v29 = vld [vmem:[%s1801_s12] ss:$0 sm:$0xff] }
 0x1d7   :  { %v505_v37 = vadd.f32 %v504_v30, %v470_v13 }
 0x1d9   :  { %v1620_v47 = vadd.f32 %v539_v28, %v505_v37 }
 0x1db   :  { %v549_v54 = vmax.f32 %v1620_v47, 0.0  ;;  %v935_v47 = vld [vmem:[#allocation8 + $0x70] sm:$0xff] }
 0x1dc   :  { %v472_v34 = vpop.f32.mrf.mxu0  ;;  %v507_v35 = vpop.f32.mrf.mxu1 }
 0x1dd   :  { %v473_v38 = vadd.f32 %v1170_v14, %v472_v34 }
 0x1df   :  { %v508_v42 = vadd.f32 %v507_v35, %v473_v38  ;;  %v782_v38 = vld [vmem:[#allocation7 + $0x178] sm:$0xff] }
 0x1e1   :  { %v1622_v48 = vadd.f32 %v542_v39, %v508_v42  ;;  %v781_v39 = vld [vmem:[#allocation7 + $0x170] sm:$0xff]  ;;  %v778_v42 = vld [vmem:[#allocation7 + $0x158] sm:$0xff] }
 0x1e3   :  { %v550_v51 = vmax.f32 %v1622_v48, 0.0  ;;  %v929_v48 = vld [vmem:[#allocation8 + $0x40] sm:$0xff] }
 0x1e4   :  { %v634_v27 = vpop.f32.mrf.mxu0 }
 0x1e5   :  { %568 = vmatpush.msrb.mxu3 %v550_v51  ;;  %v635_v14 = vadd.f32 %v1171_v29, %v634_v27  ;;  %v751_v27 = vld [vmem:[#allocation7 + $0x80] sm:$0xff] }
 0x1e7   :  { %569 = vmatpush.msrb.mxu3 %v549_v54 }
 0x1e9   :  { %570 = vmatpush.msrb.mxu3 %v548_v56 }
 0x1eb   :  { %571 = vmatpush.msrb.mxu3 %v547_v60 }
 0x1ec   :  { %v637_v30 = vpop.f32.mrf.mxu0 }
 0x1ed   :  { %572 = vmatpush.msrb.mxu3 %v546_v61  ;;  %v638_v13 = vadd.f32 %v1171_v29, %v637_v30  ;;  %v933_v29 = vld [vmem:[#allocation8 + $0x60] sm:$0xff]  ;;  %v932_v30 = vld [vmem:[#allocation8 + $0x58] sm:$0xff] }
 0x1ef   :  { %573 = vmatpush.msrb.mxu3 %v545_v62 }
 0x1f0   :  { %1144 = vmatmul.msk.f32.vlgmr.msrb.gmra.mxu3 %vm551_vm5, %v1651_v1 }
 0x1f1   :  { %640 = vmatpush.msra.mxu3 %v612_v2  ;;  %v769_v2 = vld [vmem:[#allocation7 + $0x110] sm:$0xff] }
 0x1f3   :  { %641 = vmatpush.msra.mxu3 %v611_v3  ;;  %v767_v3 = vld [vmem:[#allocation7 + $0x100] sm:$0xff] }
 0x1f5   :  { %642 = vmatpush.msra.mxu3 %v610_v4  ;;  %v748_v4 = vld [vmem:[#allocation7 + $0x68] sm:$0xff] }
 0x1f7   :  { %643 = vmatpush.msra.mxu3 %v609_v5  ;;  %v763_v5 = vld [vmem:[#allocation7 + $0xe0] sm:$0xff] }
 0x1f8   :  { %1145 = vmatmul.msk.f32.gmra.mxu3 %vm551_vm5, %v1660_v6 }
 0x1f9   :  { %644 = vmatpush.msra.mxu3 %v608_v7  ;;  %v760_v7 = vld [vmem:[#allocation7 + $0xc8] sm:$0xff] }
 0x1fb   :  { %645 = vmatpush.msra.mxu3 %v607_v8  ;;  %v743_v8 = vld [vmem:[#allocation7 + $0x40] sm:$0xff] }
 0x1fd   :  { %646 = vmatpush.msra.mxu3 %v606_v9  ;;  %v759_v9 = vld [vmem:[#allocation7 + $0xc0] sm:$0xff] }
 0x1ff   :  { %647 = vmatpush.msra.mxu3 %v605_v10  ;;  %v742_v10 = vld [vmem:[#allocation7 + $0x38] sm:$0xff] }
 0x201   :  { %648 = vmatpush.msra.mxu3 %v604_v11  ;;  %v758_v11 = vld [vmem:[#allocation7 + $0xb8] sm:$0xff] }
 0x203   :  { %649 = vmatpush.msra.mxu3 %v603_v12  ;;  %v740_v12 = vld [vmem:[#allocation7 + $0x28] sm:$0xff] }
 0x205   :  { %650 = vmatpush.msra.mxu3 %v602_v17  ;;  %v756_v17 = vld [vmem:[#allocation7 + $0xa8] sm:$0xff] }
 0x207   :  { %651 = vmatpush.msra.mxu3 %v601_v20  ;;  %v739_v20 = vld [vmem:[#allocation7 + $0x20] sm:$0xff] }
 0x209   :  { %652 = vmatpush.msra.mxu3 %v600_v21  ;;  %v755_v21 = vld [vmem:[#allocation7 + $0xa0] sm:$0xff] }
 0x20b   :  { %653 = vmatpush.msra.mxu3 %v599_v22  ;;  %v738_v22 = vld [vmem:[#allocation7 + $0x18] sm:$0xff] }
 0x20d   :  { %654 = vmatpush.msra.mxu3 %v598_v23  ;;  %v754_v23 = vld [vmem:[#allocation7 + $0x98] sm:$0xff] }
 0x20f   :  { %655 = vmatpush.msra.mxu3 %v597_v24  ;;  %v736_v24 = vld [vmem:[#allocation7 + $0x8] sm:$0xff] }
 0x273   :  { %v575_v25 = vpop.f32.mrf.mxu3 }
 0x274   :  { %656 = vmatmul.f32.vlgmr.msra.gmra.mxu3 %v575_v25  ;;  %v735_v25 = vld [vmem:[#allocation7] sm:$0xff] }
 0x27b   :  { %v578_v26 = vpop.f32.mrf.mxu3 }
 0x27c   :  { %659 = vmatmul.f32.gmra.mxu3 %v578_v26  ;;  %v752_v26 = vld [vmem:[#allocation7 + $0x88] sm:$0xff] }
 0x2f7   :  { %v657_v28 = vpop.f32.mrf.mxu3 }
 0x2f8   :  { %v658_v34 = vadd.f32 %v657_v28, %v635_v14  ;;  %v936_v28 = vld [vmem:[#allocation8 + $0x78] sm:$0xff]  ;;  %v931_v14 = vld [vmem:[#allocation8 + $0x50] sm:$0xff] }
 0x2fa   :  { %v1669_v37 = vmax.f32 %v658_v34, 0.0  ;;  %v928_v34 = vld [vmem:[#allocation8 + $0x38] sm:$0xff] }
 0x2ff   :  { %v660_v33 = vpop.f32.mrf.mxu3 }
 0x300   :  { %v661_v35 = vadd.f32 %v660_v33, %v638_v13  ;;  %v930_v13 = vld [vmem:[#allocation8 + $0x48] sm:$0xff] }
 0x302   :  { %v1667_v36 = vmax.f32 %v661_v35, 0.0  ;;  %v927_v35 = vld [vmem:[#allocation8 + $0x30] sm:$0xff] }
 0x304   :  { %679 = vmatpush.msrb.mxu0 %v1667_v36  ;;  %714 = vmatpush.msra.mxu1 %v1667_v36 }
 0x306   :  { %680 = vmatpush.msrb.mxu0 %v1669_v37  ;;  %715 = vmatpush.msra.mxu1 %v1669_v37 }
 0x307   :  { %1146 = vmatmul.msk.f32.vlgmr.msrb.gmra.mxu0 %vm281_vm4, %v1521_v15  ;;  %1152 = vmatmul.msk.f32.vlgmr.msra.gmra.mxu1 %vm281_vm4, %v1526_v16  ;;  %v776_v15 = vld [vmem:[#allocation7 + $0x148] sm:$0xff]  ;;  %v774_v16 = vld [vmem:[#allocation7 + $0x138] sm:$0xff] }
 0x308   :  { %857 = vmatpush.msra.mxu0 %v782_v38  ;;  %v926_v38 = vld [vmem:[#allocation8 + $0x28] sm:$0xff] }
 0x30a   :  { %858 = vmatpush.msra.mxu0 %v781_v39  ;;  %v925_v39 = vld [vmem:[#allocation8 + $0x20] sm:$0xff] }
 0x30c   :  { %859 = vmatpush.msra.mxu0 %v780_v40 }
 0x30e   :  { %860 = vmatpush.msra.mxu0 %v779_v41 }
 0x30f   :  { %1147 = vmatmul.msk.f32.gmra.mxu0 %vm281_vm4, %v1541_v18  ;;  %1153 = vmatmul.msk.f32.gmra.mxu1 %vm281_vm4, %v1546_v19  ;;  %v772_v18 = vld [vmem:[#allocation7 + $0x128] sm:$0xff]  ;;  %v770_v19 = vld [vmem:[#allocation7 + $0x118] sm:$0xff] }
 0x310   :  { %861 = vmatpush.msra.mxu0 %v778_v42  ;;  %v924_v42 = vld [vmem:[#allocation8 + $0x18] sm:$0xff] }
 0x312   :  { %862 = vmatpush.msra.mxu0 %v777_v43  ;;  %v923_v43 = vld [vmem:[#allocation8 + $0x10] sm:$0xff] }
 0x314   :  { %863 = vmatpush.msra.mxu0 %v776_v15  ;;  %v922_v15 = vld [vmem:[#allocation8 + $0x8] sm:$0xff] }
 0x316   :  { %864 = vmatpush.msra.mxu0 %v775_v46  ;;  %v921_v46 = vld [vmem:[#allocation8] sm:$0xff] }
 0x317   :  { %1148 = vmatmul.msk.f32.gmra.mxu0 %vm281_vm4, %v1559_v31  ;;  %1154 = vmatmul.msk.f32.gmra.mxu1 %vm281_vm4, %v1564_v32  ;;  %v768_v31 = vld [vmem:[#allocation7 + $0x108] sm:$0xff]  ;;  %v750_v32 = vld [vmem:[#allocation7 + $0x78] sm:$0xff] }
 0x318   :  { %865 = vmatpush.msra.mxu0 %v774_v16  ;;  %787 = vmatpush.msra.mxu2 %v750_v32 }
 0x31a   :  { %866 = vmatpush.msra.mxu0 %v773_v49 }
 0x31c   :  { %867 = vmatpush.msra.mxu0 %v772_v18 }
 0x31e   :  { %868 = vmatpush.msra.mxu0 %v771_v52 }
 0x31f   :  { %1149 = vmatmul.msk.f32.gmra.mxu0 %vm281_vm4, %v1573_v44  ;;  %1155 = vmatmul.msk.f32.gmra.mxu1 %vm281_vm4, %v1578_v45  ;;  %v749_v44 = vld [vmem:[#allocation7 + $0x70] sm:$0xff]  ;;  %v766_v45 = vld [vmem:[#allocation7 + $0xf8] sm:$0xff] }
 0x320   :  { %869 = vmatpush.msra.mxu0 %v770_v19  ;;  %822 = vmatpush.msrb.mxu3 %v766_v45 }
 0x321   :  { %788 = vmatpush.msra.mxu2 %v749_v44 }
 0x322   :  { %870 = vmatpush.msra.mxu0 %v769_v2 }
 0x323   :  { %789 = vmatpush.msra.mxu2 %v748_v4 }
 0x324   :  { %871 = vmatpush.msra.mxu0 %v768_v31 }
 0x326   :  { %872 = vmatpush.msra.mxu0 %v767_v3 }
 0x327   :  { %1150 = vmatmul.msk.f32.gmra.mxu0 %vm281_vm4, %v1587_v57  ;;  %1156 = vmatmul.msk.f32.gmra.mxu1 %vm281_vm4, %v1592_v58  ;;  %v765_v57 = vld [vmem:[#allocation7 + $0xf0] sm:$0xff]  ;;  %v764_v58 = vld [vmem:[#allocation7 + $0xe8] sm:$0xff] }
 0x328   :  { %823 = vmatpush.msrb.mxu3 %v765_v57 }
 0x32a   :  { %824 = vmatpush.msrb.mxu3 %v764_v58 }
 0x32c   :  { %825 = vmatpush.msrb.mxu3 %v763_v5 }
 0x32e   :  { %826 = vmatpush.msrb.mxu3 %v762_v59 }
 0x32f   :  { %1151 = vmatmul.msk.f32.gmra.mxu0 %vm281_vm4, %v1601_v63  ;;  %1157 = vmatmul.msk.f32.gmra.mxu1 %vm281_vm4, %v1606_v0  ;;  %v747_v63 = vld [vmem:[#allocation7 + $0x60] sm:$0xff]  ;;  %v746_v0 = vld [vmem:[#allocation7 + $0x58] sm:$0xff] }
 0x330   :  { %790 = vmatpush.msra.mxu2 %v747_v63 }
 0x332   :  { %791 = vmatpush.msra.mxu2 %v746_v0 }
 0x334   :  { %792 = vmatpush.msra.mxu2 %v745_v55 }
 0x337   :  { %873 = vmatmul.f32.vlgmr.msra.gmra.mxu0 %v545_v62  ;;  %v744_v62 = vld [vmem:[#allocation7 + $0x48] sm:$0xff] }
 0x338   :  { %793 = vmatpush.msra.mxu2 %v744_v62 }
 0x33a   :  { %794 = vmatpush.msra.mxu2 %v743_v8 }
 0x33c   :  { %795 = vmatpush.msra.mxu2 %v742_v10 }
 0x33e   :  { %796 = vmatpush.msra.mxu2 %v741_v53 }
 0x33f   :  { %876 = vmatmul.f32.gmra.mxu0 %v546_v61  ;;  %v761_v61 = vld [vmem:[#allocation7 + $0xd0] sm:$0xff] }
 0x340   :  { %827 = vmatpush.msrb.mxu3 %v761_v61  ;;  %797 = vmatpush.msra.mxu2 %v740_v12 }
 0x342   :  { %828 = vmatpush.msrb.mxu3 %v760_v7  ;;  %798 = vmatpush.msra.mxu2 %v739_v20 }
 0x344   :  { %829 = vmatpush.msrb.mxu3 %v759_v9  ;;  %799 = vmatpush.msra.mxu2 %v738_v22  ;;  %v951_v9 = vld [vmem:[#allocation8 + $0xf0] sm:$0xff] }
 0x346   :  { %830 = vmatpush.msrb.mxu3 %v758_v11  ;;  %800 = vmatpush.msra.mxu2 %v737_v50  ;;  %v950_v11 = vld [vmem:[#allocation8 + $0xe8] sm:$0xff] }
 0x347   :  { %879 = vmatmul.f32.gmra.mxu0 %v547_v60  ;;  %v757_v60 = vld [vmem:[#allocation7 + $0xb0] sm:$0xff] }
 0x348   :  { %831 = vmatpush.msrb.mxu3 %v757_v60  ;;  %801 = vmatpush.msra.mxu2 %v736_v24 }
 0x34a   :  { %832 = vmatpush.msrb.mxu3 %v756_v17  ;;  %802 = vmatpush.msra.mxu2 %v735_v25  ;;  %v949_v17 = vld [vmem:[#allocation8 + $0xe0] sm:$0xff] }
 0x34c   :  { %833 = vmatpush.msrb.mxu3 %v755_v21  ;;  %957 = vmatpush.msrb.mxu2 %v936_v28 }
 0x34e   :  { %834 = vmatpush.msrb.mxu3 %v754_v23  ;;  %958 = vmatpush.msrb.mxu2 %v935_v47  ;;  %v948_v23 = vld [vmem:[#allocation8 + $0xd8] sm:$0xff] }
 0x34f   :  { %882 = vmatmul.f32.gmra.mxu0 %v548_v56  ;;  %v753_v56 = vld [vmem:[#allocation7 + $0x90] sm:$0xff] }
 0x350   :  { %835 = vmatpush.msrb.mxu3 %v753_v56 }
 0x352   :  { %836 = vmatpush.msrb.mxu3 %v752_v26  ;;  %v947_v26 = vld [vmem:[#allocation8 + $0xd0] sm:$0xff] }
 0x354   :  { %837 = vmatpush.msrb.mxu3 %v751_v27 }
 0x357   :  { %885 = vmatmul.f32.gmra.mxu0 %v549_v54  ;;  %v934_v54 = vld [vmem:[#allocation8 + $0x68] sm:$0xff] }
 0x358   :  { %959 = vmatpush.msrb.mxu2 %v934_v54 }
 0x35a   :  { %960 = vmatpush.msrb.mxu2 %v933_v29  ;;  %v946_v29 = vld [vmem:[#allocation8 + $0xc8] sm:$0xff] }
 0x35c   :  { %961 = vmatpush.msrb.mxu2 %v932_v30 }
 0x35e   :  { %962 = vmatpush.msrb.mxu2 %v931_v14 }
 0x35f   :  { %888 = vmatmul.f32.gmra.mxu0 %v550_v51 }
 0x360   :  { %963 = vmatpush.msrb.mxu2 %v930_v13 }
 0x362   :  { %964 = vmatpush.msrb.mxu2 %v929_v48  ;;  %v945_v48 = vld [vmem:[#allocation8 + $0xc0] sm:$0xff] }
 0x364   :  { %965 = vmatpush.msrb.mxu2 %v928_v34 }
 0x366   :  { %966 = vmatpush.msrb.mxu2 %v927_v35  ;;  %v944_v35 = vld [vmem:[#allocation8 + $0xb8] sm:$0xff] }
 0x368   :  { %967 = vmatpush.msrb.mxu2 %v926_v38 }
 0x36a   :  { %968 = vmatpush.msrb.mxu2 %v925_v39 }
 0x36c   :  { %969 = vmatpush.msrb.mxu2 %v924_v42 }
 0x36e   :  { %970 = vmatpush.msrb.mxu2 %v923_v43  ;;  %v942_v43 = vld [vmem:[#allocation8 + $0xa8] sm:$0xff] }
 0x370   :  { %971 = vmatpush.msrb.mxu2 %v922_v15 }
 0x372   :  { %972 = vmatpush.msrb.mxu2 %v921_v46  ;;  %v941_v46 = vld [vmem:[#allocation8 + $0xa0] sm:$0xff] }
 0x384   :  { %v682_v51 = vpop.f32.mrf.mxu0  ;;  %v717_v33 = vpop.f32.mrf.mxu1 }
 0x385   :  { %803 = vmatmul.f32.vlgmr.msra.gmra.mxu2 %v682_v51  ;;  %838 = vmatmul.f32.vlgmr.msrb.gmra.mxu3 %v717_v33 }
 0x38c   :  { %v685_v40 = vpop.f32.mrf.mxu0  ;;  %v720_v41 = vpop.f32.mrf.mxu1 }
 0x38d   :  { %806 = vmatmul.f32.gmra.mxu2 %v685_v40  ;;  %841 = vmatmul.f32.gmra.mxu3 %v720_v41  ;;  %v943_v40 = vld [vmem:[#allocation8 + $0xb0] sm:$0xff] }
 0x394   :  { %v688_v16 = vpop.f32.mrf.mxu0  ;;  %v723_v49 = vpop.f32.mrf.mxu1 }
 0x395   :  { %809 = vmatmul.f32.gmra.mxu2 %v688_v16  ;;  %844 = vmatmul.f32.gmra.mxu3 %v723_v49  ;;  %v940_v49 = vld [vmem:[#allocation8 + $0x98] sm:$0xff] }
 0x39c   :  { %v691_v18 = vpop.f32.mrf.mxu0  ;;  %v726_v52 = vpop.f32.mrf.mxu1 }
 0x39d   :  { %812 = vmatmul.f32.gmra.mxu2 %v691_v18  ;;  %847 = vmatmul.f32.gmra.mxu3 %v726_v52  ;;  %v939_v18 = vld [vmem:[#allocation8 + $0x90] sm:$0xff]  ;;  %v938_v52 = vld [vmem:[#allocation8 + $0x88] sm:$0xff] }
 0x3a4   :  { %v694_v19 = vpop.f32.mrf.mxu0  ;;  %v729_v2 = vpop.f32.mrf.mxu1 }
 0x3a5   :  { %815 = vmatmul.f32.gmra.mxu2 %v694_v19  ;;  %850 = vmatmul.f32.gmra.mxu3 %v729_v2  ;;  %v937_v19 = vld [vmem:[#allocation8 + $0x80] sm:$0xff]  ;;  %v1020_v2 = vld [vmem:[%s1806_s17 + $0x78] sm:$0xff] }
 0x3ac   :  { %v697_v31 = vpop.f32.mrf.mxu0  ;;  %v732_v3 = vpop.f32.mrf.mxu1 }
 0x3ad   :  { %818 = vmatmul.f32.gmra.mxu2 %v697_v31  ;;  %853 = vmatmul.f32.gmra.mxu3 %v732_v3  ;;  %v1019_v31 = vld [vmem:[%s1806_s17 + $0x70] sm:$0xff]  ;;  %v1016_v3 = vld [vmem:[%s1806_s17 + $0x58] sm:$0xff] }
 0x3b4   :  { %v874_v32 = vpop.f32.mrf.mxu0 }
 0x3b5   :  { %973 = vmatmul.f32.vlgmr.msrb.gmra.mxu2 %v1669_v37  ;;  %v1172_v37 = vld [vmem:[%s1803_s14] ss:$0 sm:$0xff] }
 0x3bc   :  { %v877_v57 = vpop.f32.mrf.mxu0 }
 0x3bd   :  { %976 = vmatmul.f32.gmra.mxu2 %v1667_v36  ;;  %v952_v36 = vld [vmem:[#allocation8 + $0xf8] sm:$0xff] }
 0x3be   :  { %980 = vmatpush.msra.mxu3 %v952_v36  ;;  %v1062_v36 = vld [vmem:[#allocation10 + $0x60] sm:$0xff] }
 0x3c0   :  { %981 = vmatpush.msra.mxu3 %v951_v9  ;;  %v1061_v9 = vld [vmem:[#allocation10 + $0x58] sm:$0xff] }
 0x3c2   :  { %982 = vmatpush.msra.mxu3 %v950_v11  ;;  %v1059_v11 = vld [vmem:[#allocation10 + $0x48] sm:$0xff] }
 0x3c4   :  { %v880_v63 = vpop.f32.mrf.mxu0  ;;  %983 = vmatpush.msra.mxu3 %v949_v17  ;;  %v1057_v17 = vld [vmem:[#allocation10 + $0x38] sm:$0xff] }
 0x3c6   :  { %984 = vmatpush.msra.mxu3 %v948_v23 }
 0x3c8   :  { %985 = vmatpush.msra.mxu3 %v947_v26 }
 0x3ca   :  { %986 = vmatpush.msra.mxu3 %v946_v29  ;;  %v1052_v29 = vld [vmem:[#allocation10 + $0x10] sm:$0xff] }
 0x3cc   :  { %v883_v59 = vpop.f32.mrf.mxu0  ;;  %987 = vmatpush.msra.mxu3 %v945_v48 }
 0x3ce   :  { %988 = vmatpush.msra.mxu3 %v944_v35 }
 0x3d0   :  { %989 = vmatpush.msra.mxu3 %v943_v40 }
 0x3d2   :  { %990 = vmatpush.msra.mxu3 %v942_v43 }
 0x3d4   :  { %v886_v8 = vpop.f32.mrf.mxu0  ;;  %991 = vmatpush.msra.mxu3 %v941_v46 }
 0x3d6   :  { %992 = vmatpush.msra.mxu3 %v940_v49 }
 0x3d8   :  { %993 = vmatpush.msra.mxu3 %v939_v18 }
 0x3da   :  { %994 = vmatpush.msra.mxu3 %v938_v52 }
 0x3dc   :  { %v889_v25 = vpop.f32.mrf.mxu0  ;;  %995 = vmatpush.msra.mxu3 %v937_v19 }
 0x408   :  { %v804_v44 = vpop.f32.mrf.mxu2  ;;  %v839_v45 = vpop.f32.mrf.mxu3 }
 0x409   :  { %v805_v27 = vadd.f32 %v1172_v37, %v804_v44  ;;  %v1014_v44 = vld [vmem:[%s1806_s17 + $0x48] sm:$0xff] }
 0x40b   :  { %v840_v51 = vadd.f32 %v839_v45, %v805_v27  ;;  %v1013_v45 = vld [vmem:[%s1806_s17 + $0x40] sm:$0xff] }
 0x40d   :  { %v875_v41 = vadd.f32 %v874_v32, %v840_v51  ;;  %v1015_v32 = vld [vmem:[%s1806_s17 + $0x50] sm:$0xff] }
 0x40f   :  { %v892_v16 = vmax.f32 %v875_v41, 0.0 }
 0x410   :  { %v807_v4 = vpop.f32.mrf.mxu2  ;;  %v842_v58 = vpop.f32.mrf.mxu3 }
 0x411   :  { %v808_v50 = vadd.f32 %v1172_v37, %v807_v4  ;;  %v1011_v4 = vld [vmem:[%s1806_s17 + $0x30] sm:$0xff] }
 0x413   :  { %v843_v30 = vadd.f32 %v842_v58, %v808_v50  ;;  %v1010_v58 = vld [vmem:[%s1806_s17 + $0x28] sm:$0xff] }
 0x415   :  { %v878_v38 = vadd.f32 %v877_v57, %v843_v30  ;;  %v1012_v57 = vld [vmem:[%s1806_s17 + $0x38] sm:$0xff]  ;;  %v1051_v30 = vld [vmem:[#allocation10 + $0x8] sm:$0xff] }
 0x417   :  { %v893_v15 = vmax.f32 %v878_v38, 0.0 }
 0x418   :  { %v810_v5 = vpop.f32.mrf.mxu2  ;;  %v845_v0 = vpop.f32.mrf.mxu3 }
 0x419   :  { %v811_v20 = vadd.f32 %v1172_v37, %v810_v5  ;;  %v1008_v5 = vld [vmem:[%s1806_s17 + $0x18] sm:$0xff] }
 0x41b   :  { %v846_v28 = vadd.f32 %v845_v0, %v811_v20  ;;  %v1056_v20 = vld [vmem:[#allocation10 + $0x30] sm:$0xff] }
 0x41d   :  { %v881_v33 = vadd.f32 %v880_v63, %v846_v28  ;;  %v1009_v63 = vld [vmem:[%s1806_s17 + $0x20] sm:$0xff] }
 0x41f   :  { %v894_v42 = vmax.f32 %v881_v33, 0.0 }
 0x420   :  { %v813_v55 = vpop.f32.mrf.mxu2  ;;  %v848_v61 = vpop.f32.mrf.mxu3 }
 0x421   :  { %v814_v53 = vadd.f32 %v1172_v37, %v813_v55  ;;  %v1007_v55 = vld [vmem:[%s1806_s17 + $0x10] sm:$0xff] }
 0x423   :  { %v849_v56 = vadd.f32 %v848_v61, %v814_v53  ;;  %v1006_v61 = vld [vmem:[%s1806_s17 + $0x8] sm:$0xff]  ;;  %v1058_v53 = vld [vmem:[#allocation10 + $0x40] sm:$0xff] }
 0x425   :  { %v884_v14 = vadd.f32 %v883_v59, %v849_v56  ;;  %v1054_v56 = vld [vmem:[#allocation10 + $0x20] sm:$0xff] }
 0x427   :  { %v895_v39 = vmax.f32 %v884_v14, 0.0  ;;  %v1050_v14 = vld [vmem:[#allocation10] sm:$0xff] }
 0x428   :  { %v816_v62 = vpop.f32.mrf.mxu2  ;;  %v851_v7 = vpop.f32.mrf.mxu3 }
 0x429   :  { %v817_v10 = vadd.f32 %v1172_v37, %v816_v62  ;;  %v1005_v62 = vld [vmem:[%s1806_s17] sm:$0xff] }
 0x42b   :  { %v852_v21 = vadd.f32 %v851_v7, %v817_v10  ;;  %v1065_v7 = vld [vmem:[#allocation10 + $0x78] sm:$0xff]  ;;  %v1060_v10 = vld [vmem:[#allocation10 + $0x50] sm:$0xff] }
 0x42c   :  { %1070 = vmatpush.msra.mxu2 %v1065_v7 }
 0x42d   :  { %v887_v47 = vadd.f32 %v886_v8, %v852_v21  ;;  %v1064_v8 = vld [vmem:[#allocation10 + $0x70] sm:$0xff] }
 0x42e   :  { %1071 = vmatpush.msra.mxu2 %v1064_v8 }
 0x42f   :  { %v896_v34 = vmax.f32 %v887_v47, 0.0 }
 0x430   :  { %v819_v60 = vpop.f32.mrf.mxu2  ;;  %v854_v12 = vpop.f32.mrf.mxu3 }
 0x431   :  { %v820_v22 = vadd.f32 %v1172_v37, %v819_v60  ;;  %v1063_v37 = vld [vmem:[#allocation10 + $0x68] sm:$0xff] }
 0x432   :  { %1072 = vmatpush.msra.mxu2 %v1063_v37 }
 0x433   :  { %v855_v24 = vadd.f32 %v854_v12, %v820_v22  ;;  %v1173_v12 = vld [vmem:[%s1805_s16] ss:$0 sm:$0xff]  ;;  %v1055_v22 = vld [vmem:[#allocation10 + $0x28] sm:$0xff] }
 0x434   :  { %1073 = vmatpush.msra.mxu2 %v1062_v36 }
 0x435   :  { %v890_v54 = vadd.f32 %v889_v25, %v855_v24  ;;  %v1053_v25 = vld [vmem:[#allocation10 + $0x18] sm:$0xff] }
 0x436   :  { %1074 = vmatpush.msra.mxu2 %v1061_v9 }
 0x437   :  { %v897_v13 = vmax.f32 %v890_v54, 0.0 }
 0x438   :  { %1075 = vmatpush.msra.mxu2 %v1060_v10  ;;  %v974_v60 = vpop.f32.mrf.mxu2 }
 0x439   :  { %908 = vmatpush.msrb.mxu1 %v897_v13  ;;  %v975_v21 = vadd.f32 %v1173_v12, %v974_v60  ;;  %v1174_v13 = vld [vmem:[%s1807_s18] ss:$0 sm:$0xff] }
 0x43a   :  { %1076 = vmatpush.msra.mxu2 %v1059_v11 }
 0x43b   :  { %909 = vmatpush.msrb.mxu1 %v896_v34 }
 0x43c   :  { %1077 = vmatpush.msra.mxu2 %v1058_v53 }
 0x43d   :  { %910 = vmatpush.msrb.mxu1 %v895_v39  ;;  %v1175_v39 = vld [vmem:[%s1809_s20] ss:$0 sm:$0xff] }
 0x43e   :  { %1078 = vmatpush.msra.mxu2 %v1057_v17 }
 0x43f   :  { %911 = vmatpush.msrb.mxu1 %v894_v42 }
 0x440   :  { %1079 = vmatpush.msra.mxu2 %v1056_v20  ;;  %v977_v26 = vpop.f32.mrf.mxu2 }
 0x441   :  { %912 = vmatpush.msrb.mxu1 %v893_v15  ;;  %v978_v27 = vadd.f32 %v1173_v12, %v977_v26 }
 0x442   :  { %1080 = vmatpush.msra.mxu2 %v1055_v22 }
 0x443   :  { %913 = vmatpush.msrb.mxu1 %v892_v16 }
 0x444   :  { %1158 = vmatmul.msk.f32.vlgmr.msrb.gmra.mxu1 %vm551_vm5, %v1651_v1  ;;  %v1018_v1 = vld [vmem:[%s1806_s17 + $0x68] sm:$0xff]  ;;  %1081 = vmatpush.msra.mxu2 %v1054_v56 }
 0x445   :  { %1025 = vmatpush.msra.mxu1 %v1020_v2 }
 0x446   :  { %1082 = vmatpush.msra.mxu2 %v1053_v25 }
 0x447   :  { %1026 = vmatpush.msra.mxu1 %v1019_v31 }
 0x448   :  { %1083 = vmatpush.msra.mxu2 %v1052_v29 }
 0x449   :  { %1027 = vmatpush.msra.mxu1 %v1018_v1 }
 0x44a   :  { %1084 = vmatpush.msra.mxu2 %v1051_v30 }
 0x44c   :  { %1159 = vmatmul.msk.f32.gmra.mxu1 %vm551_vm5, %v1660_v6  ;;  %v1017_v6 = vld [vmem:[%s1806_s17 + $0x60] sm:$0xff]  ;;  %1085 = vmatpush.msra.mxu2 %v1050_v14 }
 0x44d   :  { %1028 = vmatpush.msra.mxu1 %v1017_v6 }
 0x44f   :  { %1029 = vmatpush.msra.mxu1 %v1016_v3 }
 0x451   :  { %1030 = vmatpush.msra.mxu1 %v1015_v32 }
 0x453   :  { %1031 = vmatpush.msra.mxu1 %v1014_v44 }
 0x455   :  { %1032 = vmatpush.msra.mxu1 %v1013_v45 }
 0x457   :  { %1033 = vmatpush.msra.mxu1 %v1012_v57 }
 0x459   :  { %1034 = vmatpush.msra.mxu1 %v1011_v4 }
 0x45b   :  { %1035 = vmatpush.msra.mxu1 %v1010_v58 }
 0x45d   :  { %1036 = vmatpush.msra.mxu1 %v1009_v63 }
 0x45f   :  { %1037 = vmatpush.msra.mxu1 %v1008_v5 }
 0x461   :  { %1038 = vmatpush.msra.mxu1 %v1007_v55 }
 0x463   :  { %1039 = vmatpush.msra.mxu1 %v1006_v61 }
 0x465   :  { %1040 = vmatpush.msra.mxu1 %v1005_v62 }
 0x4c1   :  { %v915_v0 = vpop.f32.mrf.mxu1 }
 0x4c2   :  { %996 = vmatmul.f32.vlgmr.msra.gmra.mxu3 %v915_v0 }
 0x4c9   :  { %v918_v59 = vpop.f32.mrf.mxu1 }
 0x4ca   :  { %999 = vmatmul.f32.gmra.mxu3 %v918_v59 }
 0x545   :  { %v997_v23 = vpop.f32.mrf.mxu3 }
 0x546   :  { %v998_v50 = vadd.f32 %v997_v23, %v975_v21 }
 0x548   :  { %v1003_v24 = vmax.f32 %v998_v50, 0.0 }
 0x54a   :  { %1095 = vst [vmem:[#allocation11] sm:$0xff] %v1003_v24  ;;  %1041 = vmatmul.f32.vlgmr.msra.gmra.mxu1 %v1003_v24 }
 0x54d   :  { %v1000_v28 = vpop.f32.mrf.mxu3 }
 0x54e   :  { %v1001_v47 = vadd.f32 %v1000_v28, %v978_v27 }
 0x550   :  { %v1004_v54 = vmax.f32 %v1001_v47, 0.0 }
 0x552   :  { %1096 = vst [vmem:[#allocation11 + $0x8] sm:$0xff] %v1004_v54  ;;  %1044 = vmatmul.f32.gmra.mxu1 %v1004_v54 }
 0x553   :  { %1111 = dma.vmem_to_hbm [thread:$0]  %s1104_s8, 256, %s1106_s9, [#allocation4], %s1329_s5, %s1329_s5, %s1330_s24  }
 0x5c7   :  { %v1042_v48 = vpop.f32.mrf.mxu1 }
 0x5c8   :  { %v1043_v51 = vadd.f32 %v1174_v13, %v1042_v48 }
 0x5ca   :  { %v1048_v33 = vmax.f32 %v1043_v51, 0.0 }
 0x5cc   :  { %1086 = vmatmul.f32.vlgmr.msra.gmra.mxu2 %v1048_v33 }
 0x5cf   :  { %v1045_v34 = vpop.f32.mrf.mxu1 }
 0x5d0   :  { %v1046_v35 = vadd.f32 %v1174_v13, %v1045_v34 }
 0x5d2   :  { %v1049_v38 = vmax.f32 %v1046_v35, 0.0 }
 0x5d4   :  { %1089 = vmatmul.f32.gmra.mxu2 %v1049_v38 }
 0x64f   :  { %v1087_v40 = vpop.f32.mrf.mxu2 }
 0x650   :  { %v1088_v41 = vadd.f32 %v1175_v39, %v1087_v40 }
 0x652   :  { %1093 = vst [vmem:[%s1810_s21] sm:$0xff] %v1088_v41 }
 0x657   :  { %v1090_v42 = vpop.f32.mrf.mxu2 }
 0x658   :  { %v1091_v43 = vadd.f32 %v1175_v39, %v1090_v42 }
 0x65a   :  { %1094 = vst [vmem:[%s1810_s21 + $0x8] sm:$0xff] %v1091_v43 }
 0x65b   :  { %1326 = dma.done.wait [#allocation4], 256  }
 0x65c   :  { %1327 = vsyncadd [#allocation4], 4294967040 }
 0x65d   :  { %1118 = vsyncpa [#allocation3], 1 }
 0x65e   :  { %1119 = vsyncpa [#allocation6], 1 }
 0x65f   :  { %1120 = vsyncpa [#allocation9], 1 }
 0x660   :  { %1121 = vsyncpa [#allocation4], 1 }

</bundles_post_ra>
